<compile_context>
chip_gen: v5e
topology: v5e:2x2
jax: 0.10.0
libtpu: 0.0.40
codegen_flags: <defaults>
</compile_context>

<pallas_src>
import functools
import math

import jax
import jax.numpy as jnp
from jax.experimental import pallas as pl
from jax.experimental.pallas import tpu as pltpu

LN_EPS = 1e-5                     # PyTorch nn.LayerNorm default
VMEM_LIMIT = 64 * 1024 * 1024     # <= physical VMEM on v5e/v6e/v7x


def _layernorm(h, w, b):
    mu = jnp.mean(h, axis=-1, keepdims=True)
    var = jnp.mean((h - mu) ** 2, axis=-1, keepdims=True)
    return (h - mu) * jax.lax.rsqrt(var + LN_EPS) * w + b


def _gelu_tanh(x):
    # TODO(synk): MLP class body not shown; assuming GPT-style tanh-approx GELU.
    c = math.sqrt(2.0 / math.pi)
    return 0.5 * x * (1.0 + jnp.tanh(c * (x + 0.044715 * x * x * x)))


def _seq_tile(T):
    for t in (256, 128):
        if T > t and T % t == 0:
            return t
    return T


# ----------------------------------------------------------------------------
# Kernel 1: LN1 + QKV projection, emits head-major bf16 q/k/v
# ----------------------------------------------------------------------------
def qkv_kernel(x_ref, ln1w_ref, ln1b_ref, wqkv_ref, bqkv_ref,
               q_ref, k_ref, v_ref, *, num_heads):
    x = x_ref[0].astype(jnp.float32)                       # (Tt, D)
    Tt, D = x.shape
    H = num_heads
    hd = D // H

    h = _layernorm(x, ln1w_ref[...], ln1b_ref[...])
    qkv = jnp.dot(h.astype(jnp.bfloat16), wqkv_ref[...],
                  preferred_element_type=jnp.float32) + bqkv_ref[...]

    def head_major(col):
        part = qkv[:, col * D:(col + 1) * D].reshape(Tt, H, hd)
        return jnp.transpose(part, (1, 0, 2)).astype(jnp.bfloat16)

    q_ref[0] = head_major(0)
    k_ref[0] = head_major(1)
    v_ref[0] = head_major(2)


# ----------------------------------------------------------------------------
# Kernel 2: causal flash attention + output projection + residual
# grid = (B, n_q_tiles, n_kv_tiles)   (kv axis is the reduction, "arbitrary")
# ----------------------------------------------------------------------------
def attn_kernel(q_ref, k_ref, v_ref, x_ref, wao_ref, bao_ref, o_ref,
                m_sc, l_sc, acc_sc, *, tq, tk):
    qi = pl.program_id(1)
    ki = pl.program_id(2)
    _, H, Tq, hd = q_ref.shape
    scale = 1.0 / math.sqrt(hd)

    @pl.when(ki == 0)
    def _init():
        m_sc[...] = jnp.full_like(m_sc, -jnp.inf)
        l_sc[...] = jnp.zeros_like(l_sc)
        acc_sc[...] = jnp.zeros_like(acc_sc)

    @pl.when(ki <= qi)                 # tiles fully above the diagonal are skipped
    def _compute():
        q = q_ref[0]                                       # (H, Tq, hd) bf16
        k = k_ref[0]                                       # (H, Tk, hd) bf16
        v = v_ref[0]                                       # (H, Tk, hd) bf16
        s = jnp.einsum('hqd,hkd->hqk', q, k,
                       preferred_element_type=jnp.float32) * scale
        q_pos = qi * tq + jax.lax.broadcasted_iota(jnp.int32, (tq, tk), 0)
        k_pos = ki * tk + jax.lax.broadcasted_iota(jnp.int32, (tq, tk), 1)
        s = jnp.where((k_pos <= q_pos)[None, :, :], s, -1e30)   # f32 mask

        m_prev = m_sc[...]                                 # (H, Tq, 1)
        m_new = jnp.maximum(m_prev, jnp.max(s, axis=-1, keepdims=True))
        alpha = jnp.exp(m_prev - m_new)
        p = jnp.exp(s - m_new)                             # (H, Tq, Tk) f32
        l_sc[...] = alpha * l_sc[...] + jnp.sum(p, axis=-1, keepdims=True)
        acc_sc[...] = alpha * acc_sc[...] + jnp.einsum(
            'hqk,hkd->hqd', p.astype(v.dtype), v,
            preferred_element_type=jnp.float32)
        m_sc[...] = m_new

    @pl.when(ki == pl.num_programs(2) - 1)
    def _finalize():
        inv_l = pl.reciprocal(l_sc[...], approx=True)      # EUP, ~free
        ctx = acc_sc[...] * inv_l                          # (H, Tq, hd) f32
        ctx = jnp.transpose(ctx, (1, 0, 2)).reshape(Tq, H * hd)
        attn = jnp.dot(ctx.astype(jnp.bfloat16), wao_ref[...],
                       preferred_element_type=jnp.float32) + bao_ref[...]
        o_ref[0] = (x_ref[0].astype(jnp.float32) + attn).astype(o_ref.dtype)


# ----------------------------------------------------------------------------
# Kernel 3: LN2 + MLP + residual (+ optional fused final LayerNorm)
# ----------------------------------------------------------------------------
def mlp_kernel(x_ref, ln2w_ref, ln2b_ref, wfc_ref, bfc_ref, wmo_ref, bmo_ref,
               lnfw_ref, lnfb_ref, o_ref, *, apply_final_ln):
    x = x_ref[0].astype(jnp.float32)                       # (Tt, D)
    h = _layernorm(x, ln2w_ref[...], ln2b_ref[...])
    fc = jnp.dot(h.astype(jnp.bfloat16), wfc_ref[...],
                 preferred_element_type=jnp.float32) + bfc_ref[...]
    fc = _gelu_tanh(fc)
    out = jnp.dot(fc.astype(jnp.bfloat16), wmo_ref[...],
                  preferred_element_type=jnp.float32) + bmo_ref[...]
    x = x + out                                            # dropout p=0.0 -> identity
    if apply_final_ln:
        x = _layernorm(x, lnfw_ref[...], lnfb_ref[...])
    o_ref[0] = x.astype(o_ref.dtype)


# ----------------------------------------------------------------------------
# Wrappers
# ----------------------------------------------------------------------------
def qkv_projection(x, p, num_heads):
    B, T, D = x.shape
    H = num_heads
    hd = D // H
    Tt = _seq_tile(T)
    kernel = functools.partial(qkv_kernel, num_heads=num_heads)
    flops = 2 * B * T * D * 3 * D
    bytes_accessed = x.size * 4 + p['w_qkv'].size * 2 + 3 * B * T * D * 2
    return pl.pallas_call(
        kernel,
        out_shape=tuple(jax.ShapeDtypeStruct((B, H, T, hd), jnp.bfloat16)
                        for _ in range(3)),
        grid=(B, T // Tt),
        in_specs=[
            pl.BlockSpec((1, Tt, D), lambda b, t: (b, t, 0)),
            pl.BlockSpec((1, D), lambda b, t: (0, 0)),
            pl.BlockSpec((1, D), lambda b, t: (0, 0)),
            pl.BlockSpec((D, 3 * D), lambda b, t: (0, 0)),
            pl.BlockSpec((1, 3 * D), lambda b, t: (0, 0)),
        ],
        out_specs=tuple(pl.BlockSpec((1, H, Tt, hd), lambda b, t: (b, 0, t, 0))
                        for _ in range(3)),
        compiler_params=pltpu.CompilerParams(
            dimension_semantics=("parallel", "parallel"),
            vmem_limit_bytes=VMEM_LIMIT),
        cost_estimate=pl.CostEstimate(flops=int(flops), transcendentals=0,
                                      bytes_accessed=int(bytes_accessed)),
    )(x, p['ln1_w'], p['ln1_b'], p['w_qkv'], p['b_qkv'])


def attention(x, q, k, v, p, num_heads):
    B, T, D = x.shape
    H = num_heads
    hd = D // H
    Tq = _seq_tile(T)
    n_t = T // Tq
    kernel = functools.partial(attn_kernel, tq=Tq, tk=Tq)
    flops = 4 * B * H * T * T * hd + 2 * B * T * D * D
    transcendentals = B * H * T * T
    bytes_accessed = 3 * B * T * D * 2 + 2 * B * T * D * 4 + D * D * 2
    return pl.pallas_call(
        kernel,
        out_shape=jax.ShapeDtypeStruct((B, T, D), x.dtype),
        grid=(B, n_t, n_t),
        in_specs=[
            pl.BlockSpec((1, H, Tq, hd), lambda b, qi, ki: (b, 0, qi, 0)),
            # clamp kv index so fully-masked (skipped) tiles are never fetched
            pl.BlockSpec((1, H, Tq, hd),
                         lambda b, qi, ki: (b, 0, jnp.minimum(ki, qi), 0)),
            pl.BlockSpec((1, H, Tq, hd),
                         lambda b, qi, ki: (b, 0, jnp.minimum(ki, qi), 0)),
            pl.BlockSpec((1, Tq, D), lambda b, qi, ki: (b, qi, 0)),
            pl.BlockSpec((D, D), lambda b, qi, ki: (0, 0)),
            pl.BlockSpec((1, D), lambda b, qi, ki: (0, 0)),
        ],
        out_specs=pl.BlockSpec((1, Tq, D), lambda b, qi, ki: (b, qi, 0)),
        scratch_shapes=[pltpu.VMEM((H, Tq, 1), jnp.float32),
                        pltpu.VMEM((H, Tq, 1), jnp.float32),
                        pltpu.VMEM((H, Tq, hd), jnp.float32)],
        compiler_params=pltpu.CompilerParams(
            dimension_semantics=("parallel", "parallel", "arbitrary"),
            vmem_limit_bytes=VMEM_LIMIT),
        cost_estimate=pl.CostEstimate(flops=int(flops),
                                      transcendentals=int(transcendentals),
                                      bytes_accessed=int(bytes_accessed)),
    )(q, k, v, x, p['w_ao'], p['b_ao'])


def mlp_block(x, p, lnf_w, lnf_b, apply_final_ln):
    B, T, D = x.shape
    Tt = _seq_tile(T)
    kernel = functools.partial(mlp_kernel, apply_final_ln=apply_final_ln)
    flops = 2 * B * T * D * 4 * D * 2
    transcendentals = B * T * 4 * D
    bytes_accessed = 2 * x.size * 4 + (p['w_fc'].size + p['w_mo'].size) * 2
    return pl.pallas_call(
        kernel,
        out_shape=jax.ShapeDtypeStruct((B, T, D), x.dtype),
        grid=(B, T // Tt),
        in_specs=[
            pl.BlockSpec((1, Tt, D), lambda b, t: (b, t, 0)),
            pl.BlockSpec((1, D), lambda b, t: (0, 0)),
            pl.BlockSpec((1, D), lambda b, t: (0, 0)),
            pl.BlockSpec((D, 4 * D), lambda b, t: (0, 0)),
            pl.BlockSpec((1, 4 * D), lambda b, t: (0, 0)),
            pl.BlockSpec((4 * D, D), lambda b, t: (0, 0)),
            pl.BlockSpec((1, D), lambda b, t: (0, 0)),
            pl.BlockSpec((1, D), lambda b, t: (0, 0)),
            pl.BlockSpec((1, D), lambda b, t: (0, 0)),
        ],
        out_specs=pl.BlockSpec((1, Tt, D), lambda b, t: (b, t, 0)),
        compiler_params=pltpu.CompilerParams(
            dimension_semantics=("parallel", "parallel"),
            vmem_limit_bytes=VMEM_LIMIT),
        cost_estimate=pl.CostEstimate(flops=int(flops),
                                      transcendentals=int(transcendentals),
                                      bytes_accessed=int(bytes_accessed)),
    )(x, p['ln2_w'], p['ln2_b'], p['w_fc'], p['b_fc'], p['w_mo'], p['b_mo'],
      lnf_w, lnf_b)


def transformer_forward(tokens, params, num_heads):
    B, T = tokens.shape
    D = params['wte'].shape[1]
    assert D % num_heads == 0
    n_layers = len(params['blocks'])
    assert n_layers >= 1
    # Embedding gather is glue (plain JAX); hot path (LN/attention/MLP) is Pallas.
    x = params['wte'][tokens] + params['wpe'][:T][None, :, :]
    for li, p in enumerate(params['blocks']):
        q, k, v = qkv_projection(x, p, num_heads)
        x = attention(x, q, k, v, p, num_heads)
        x = mlp_block(x, p, params['ln_f_w'], params['ln_f_b'],
                      apply_final_ln=(li == n_layers - 1))
    return x


# ----------------------------------------------------------------------------
# Deterministic parameter init (mirrors the module's __init__ shapes)
# ----------------------------------------------------------------------------
def init_params(key, vocab_size, embed_dim, context_len, layers):
    D = embed_dim
    keys = jax.random.split(key, 2 + 4 * layers)
    params = {
        'wte': 0.02 * jax.random.normal(keys[0], (vocab_size, D), jnp.float32),
        'wpe': 0.01 * jax.random.normal(keys[1], (context_len, D), jnp.float32),
        'ln_f_w': jnp.ones((1, D), jnp.float32),
        'ln_f_b': jnp.zeros((1, D), jnp.float32),
        'blocks': [],
    }
    resid_scale = layers ** (-0.5)   # scale_residual_weights on attn.c_proj
    for li in range(layers):
        k0, k1, k2, k3 = keys[2 + 4 * li: 2 + 4 * (li + 1)]
        params['blocks'].append({
            'ln1_w': jnp.ones((1, D), jnp.float32),
            'ln1_b': jnp.zeros((1, D), jnp.float32),
            'w_qkv': (0.02 * jax.random.normal(k0, (D, 3 * D), jnp.float32)
                      ).astype(jnp.bfloat16),
            'b_qkv': jnp.zeros((1, 3 * D), jnp.float32),
            'w_ao': (resid_scale * 0.02 * jax.random.normal(k1, (D, D), jnp.float32)
                     ).astype(jnp.bfloat16),
            'b_ao': jnp.zeros((1, D), jnp.float32),
            'ln2_w': jnp.ones((1, D), jnp.float32),
            'ln2_b': jnp.zeros((1, D), jnp.float32),
            'w_fc': (0.02 * jax.random.normal(k2, (D, 4 * D), jnp.float32)
                     ).astype(jnp.bfloat16),
            'b_fc': jnp.zeros((1, 4 * D), jnp.float32),
            'w_mo': (0.02 * jax.random.normal(k3, (4 * D, D), jnp.float32)
                     ).astype(jnp.bfloat16),
            'b_mo': jnp.zeros((1, D), jnp.float32),
        })
    return params


# ----------------------------------------------------------------------------
# Pure-JAX reference (same bf16-operand / f32-accumulate matmul policy)
# ----------------------------------------------------------------------------
def reference_forward(tokens, params, num_heads):
    def bf(a):
        return a.astype(jnp.bfloat16)

    def mm(a, b):
        return jnp.dot(bf(a), bf(b), preferred_element_type=jnp.float32)

    B, T = tokens.shape
    x = params['wte'][tokens] + params['wpe'][:T][None, :, :]
    D = x.shape[-1]
    hd = D // num_heads
    for p in params['blocks']:
        h = _layernorm(x, p['ln1_w'], p['ln1_b'])
        qkv = mm(h, p['w_qkv']) + p['b_qkv']
        q, k, v = jnp.split(qkv, 3, axis=-1)
        q = q.reshape(B, T, num_heads, hd)
        k = k.reshape(B, T, num_heads, hd)
        v = v.reshape(B, T, num_heads, hd)
        s = jnp.einsum('bqhd,bkhd->bhqk', bf(q), bf(k),
                       preferred_element_type=jnp.float32) / math.sqrt(hd)
        mask = jnp.tril(jnp.ones((T, T), bool))
        s = jnp.where(mask[None, None], s, -1e30)
        a = jax.nn.softmax(s, axis=-1)
        o = jnp.einsum('bhqk,bkhd->bqhd', bf(a), bf(v),
                       preferred_element_type=jnp.float32).reshape(B, T, D)
        x = x + (mm(o, p['w_ao']) + p['b_ao'])
        h2 = _layernorm(x, p['ln2_w'], p['ln2_b'])
        m = mm(_gelu_tanh(mm(h2, p['w_fc']) + p['b_fc']), p['w_mo']) + p['b_mo']
        x = x + m
    return _layernorm(x, params['ln_f_w'], params['ln_f_b'])


if __name__ == "__main__":
    vocab_size, embed_dim, context_len, layers, num_heads = 64, 32, 16, 2, 4
    B, T = 2, 8

    root = jax.random.PRNGKey(0)
    k_params, k_tok = jax.random.split(root)
    params = init_params(k_params, vocab_size, embed_dim, context_len, layers)
    tokens = jax.random.randint(k_tok, (B, T), 0, vocab_size, dtype=jnp.int32)

    fwd = jax.jit(functools.partial(transformer_forward, num_heads=num_heads))
    out = fwd(tokens, params)
    out = jax.block_until_ready(out)

    ref = reference_forward(tokens, params, num_heads)
    assert out.shape == (B, T, embed_dim)
    assert bool(jnp.all(jnp.isfinite(out)))
    max_err = float(jnp.max(jnp.abs(out - ref)))
    assert bool(jnp.allclose(out, ref, atol=1e-2, rtol=1e-2)), f"max err {max_err}"
    print("KERNEL_OK")
</pallas_src>

<mosaic_0001>
module attributes {stable_mosaic.version = 11 : i64} {
  func.func @qkv_kernel(%arg0: i32, %arg1: i32, %arg2: memref<1x8x32xf32, #tpu.memory_space<vmem>>, %arg3: memref<1x32xf32, #tpu.memory_space<vmem>>, %arg4: memref<1x32xf32, #tpu.memory_space<vmem>>, %arg5: memref<32x96xbf16, #tpu.memory_space<vmem>>, %arg6: memref<1x96xf32, #tpu.memory_space<vmem>>, %arg7: memref<1x4x8x8xbf16, #tpu.memory_space<vmem>>, %arg8: memref<1x4x8x8xbf16, #tpu.memory_space<vmem>>, %arg9: memref<1x4x8x8xbf16, #tpu.memory_space<vmem>>) attributes {dimension_semantics = [#tpu.dimension_semantics<parallel>, #tpu.dimension_semantics<parallel>], iteration_bounds = array<i64: 2, 1>, scalar_prefetch = 0 : i64, scratch_operands = 0 : i64, tpu.core_type = #tpu.core_type<tc>, window_params = [{transform_indices = @transform_0, window_bounds = array<i64: 1, 8, 32>}, {pipeline_mode = #tpu.pipeline_mode<synchronous>, transform_indices = @transform_1, window_bounds = array<i64: 1, 32>}, {pipeline_mode = #tpu.pipeline_mode<synchronous>, transform_indices = @transform_2, window_bounds = array<i64: 1, 32>}, {pipeline_mode = #tpu.pipeline_mode<synchronous>, transform_indices = @transform_3, window_bounds = array<i64: 32, 96>}, {pipeline_mode = #tpu.pipeline_mode<synchronous>, transform_indices = @transform_4, window_bounds = array<i64: 1, 96>}, {transform_indices = @transform_5, window_bounds = array<i64: 1, 4, 8, 8>}, {transform_indices = @transform_6, window_bounds = array<i64: 1, 4, 8, 8>}, {transform_indices = @transform_7, window_bounds = array<i64: 1, 4, 8, 8>}]} {
    %c0 = arith.constant 0 : index
    %c0_0 = arith.constant 0 : index
    %c0_1 = arith.constant 0 : index
    %0 = vector.load %arg2[%c0, %c0_0, %c0_1] : memref<1x8x32xf32, #tpu.memory_space<vmem>>, vector<1x8x32xf32>
    %1 = vector.shape_cast %0 : vector<1x8x32xf32> to vector<8x32xf32>
    %c0_2 = arith.constant 0 : index
    %c0_3 = arith.constant 0 : index
    %2 = vector.load %arg3[%c0_2, %c0_3] : memref<1x32xf32, #tpu.memory_space<vmem>>, vector<1x32xf32>
    %c0_4 = arith.constant 0 : index
    %c0_5 = arith.constant 0 : index
    %3 = vector.load %arg4[%c0_4, %c0_5] : memref<1x32xf32, #tpu.memory_space<vmem>>, vector<1x32xf32>
    %cst = arith.constant dense<0.000000e+00> : vector<8xf32>
    %4 = vector.multi_reduction <add>, %1, %cst [1] : vector<8x32xf32> to vector<8xf32>
    %5 = vector.shape_cast %4 : vector<8xf32> to vector<8x1xf32>
    %cst_6 = arith.constant 3.200000e+01 : f32
    %6 = vector.broadcast %cst_6 : f32 to vector<8x1xf32>
    %7 = arith.divf %5, %6 : vector<8x1xf32>
    %8 = vector.broadcast %7 : vector<8x1xf32> to vector<8x32xf32>
    %9 = arith.subf %1, %8 : vector<8x32xf32>
    %10 = arith.mulf %9, %9 : vector<8x32xf32>
    %cst_7 = arith.constant dense<0.000000e+00> : vector<8xf32>
    %11 = vector.multi_reduction <add>, %10, %cst_7 [1] : vector<8x32xf32> to vector<8xf32>
    %12 = vector.shape_cast %11 : vector<8xf32> to vector<8x1xf32>
    %cst_8 = arith.constant 3.200000e+01 : f32
    %13 = vector.broadcast %cst_8 : f32 to vector<8x1xf32>
    %14 = arith.divf %12, %13 : vector<8x1xf32>
    %15 = vector.broadcast %7 : vector<8x1xf32> to vector<8x32xf32>
    %16 = arith.subf %1, %15 : vector<8x32xf32>
    %cst_9 = arith.constant 9.99999974E-6 : f32
    %17 = vector.broadcast %cst_9 : f32 to vector<8x1xf32>
    %18 = arith.addf %14, %17 : vector<8x1xf32>
    %19 = math.rsqrt %18 : vector<8x1xf32>
    %20 = vector.broadcast %19 : vector<8x1xf32> to vector<8x32xf32>
    %21 = arith.mulf %16, %20 : vector<8x32xf32>
    %22 = vector.broadcast %2 : vector<1x32xf32> to vector<8x32xf32>
    %23 = arith.mulf %21, %22 : vector<8x32xf32>
    %24 = vector.broadcast %3 : vector<1x32xf32> to vector<8x32xf32>
    %25 = arith.addf %23, %24 : vector<8x32xf32>
    %26 = arith.truncf %25 : vector<8x32xf32> to vector<8x32xbf16>
    %c0_10 = arith.constant 0 : index
    %c0_11 = arith.constant 0 : index
    %27 = vector.load %arg5[%c0_10, %c0_11] : memref<32x96xbf16, #tpu.memory_space<vmem>>, vector<32x96xbf16>
    %cst_12 = arith.constant dense<0.000000e+00> : vector<8x96xf32>
    %28 = tpu.matmul %26, %27, %cst_12 {dimension_numbers = #tpu.dot_dimension_numbers<[1], [0], [0], [1], [0, 0, 1, 1], [], []>} : vector<8x32xbf16>, vector<32x96xbf16>, vector<8x96xf32> -> vector<8x96xf32>
    %c0_13 = arith.constant 0 : index
    %c0_14 = arith.constant 0 : index
    %29 = vector.load %arg6[%c0_13, %c0_14] : memref<1x96xf32, #tpu.memory_space<vmem>>, vector<1x96xf32>
    %30 = vector.broadcast %29 : vector<1x96xf32> to vector<8x96xf32>
    %31 = arith.addf %28, %30 : vector<8x96xf32>
    %32 = vector.extract_strided_slice %31 {offsets = [0, 0], sizes = [8, 32], strides = [1, 1]} : vector<8x96xf32> to vector<8x32xf32>
    %33 = vector.shape_cast %32 : vector<8x32xf32> to vector<8x4x8xf32>
    %34 = tpu.transpose %33, [1, 0, 2] : vector<8x4x8xf32> -> vector<4x8x8xf32>
    %35 = arith.truncf %34 : vector<4x8x8xf32> to vector<4x8x8xbf16>
    %c0_15 = arith.constant 0 : index
    %c0_16 = arith.constant 0 : index
    %c0_17 = arith.constant 0 : index
    %c0_18 = arith.constant 0 : index
    %36 = vector.load %arg7[%c0_15, %c0_16, %c0_17, %c0_18] : memref<1x4x8x8xbf16, #tpu.memory_space<vmem>>, vector<1x4x8x8xbf16>
    %37 = vector.shape_cast %36 : vector<1x4x8x8xbf16> to vector<4x8x8xbf16>
    %38 = vector.shape_cast %35 : vector<4x8x8xbf16> to vector<1x4x8x8xbf16>
    tpu.vector_store %arg7[%c0_15, %c0_16, %c0_17, %c0_18], %38 {strides = array<i32>} : memref<1x4x8x8xbf16, #tpu.memory_space<vmem>>, vector<1x4x8x8xbf16>,
    %39 = vector.extract_strided_slice %31 {offsets = [0, 32], sizes = [8, 32], strides = [1, 1]} : vector<8x96xf32> to vector<8x32xf32>
    %40 = vector.shape_cast %39 : vector<8x32xf32> to vector<8x4x8xf32>
    %41 = tpu.transpose %40, [1, 0, 2] : vector<8x4x8xf32> -> vector<4x8x8xf32>
    %42 = arith.truncf %41 : vector<4x8x8xf32> to vector<4x8x8xbf16>
    %c0_19 = arith.constant 0 : index
    %c0_20 = arith.constant 0 : index
    %c0_21 = arith.constant 0 : index
    %c0_22 = arith.constant 0 : index
    %43 = vector.load %arg8[%c0_19, %c0_20, %c0_21, %c0_22] : memref<1x4x8x8xbf16, #tpu.memory_space<vmem>>, vector<1x4x8x8xbf16>
    %44 = vector.shape_cast %43 : vector<1x4x8x8xbf16> to vector<4x8x8xbf16>
    %45 = vector.shape_cast %42 : vector<4x8x8xbf16> to vector<1x4x8x8xbf16>
    tpu.vector_store %arg8[%c0_19, %c0_20, %c0_21, %c0_22], %45 {strides = array<i32>} : memref<1x4x8x8xbf16, #tpu.memory_space<vmem>>, vector<1x4x8x8xbf16>,
    %46 = vector.extract_strided_slice %31 {offsets = [0, 64], sizes = [8, 32], strides = [1, 1]} : vector<8x96xf32> to vector<8x32xf32>
    %47 = vector.shape_cast %46 : vector<8x32xf32> to vector<8x4x8xf32>
    %48 = tpu.transpose %47, [1, 0, 2] : vector<8x4x8xf32> -> vector<4x8x8xf32>
    %49 = arith.truncf %48 : vector<4x8x8xf32> to vector<4x8x8xbf16>
    %c0_23 = arith.constant 0 : index
    %c0_24 = arith.constant 0 : index
    %c0_25 = arith.constant 0 : index
    %c0_26 = arith.constant 0 : index
    %50 = vector.load %arg9[%c0_23, %c0_24, %c0_25, %c0_26] : memref<1x4x8x8xbf16, #tpu.memory_space<vmem>>, vector<1x4x8x8xbf16>
    %51 = vector.shape_cast %50 : vector<1x4x8x8xbf16> to vector<4x8x8xbf16>
    %52 = vector.shape_cast %49 : vector<4x8x8xbf16> to vector<1x4x8x8xbf16>
    tpu.vector_store %arg9[%c0_23, %c0_24, %c0_25, %c0_26], %52 {strides = array<i32>} : memref<1x4x8x8xbf16, #tpu.memory_space<vmem>>, vector<1x4x8x8xbf16>,
    return
  }
  func.func @transform_0(%arg0: i32, %arg1: i32) -> (i32, i32, i32) {
    %c0_i32 = arith.constant 0 : i32
    %c0_i32_0 = arith.constant 0 : i32
    return %arg0, %arg1, %c0_i32 : i32, i32, i32
  }
  func.func @transform_1(%arg0: i32, %arg1: i32) -> (i32, i32) {
    %c0_i32 = arith.constant 0 : i32
    %c0_i32_0 = arith.constant 0 : i32
    %c0_i32_1 = arith.constant 0 : i32
    return %c0_i32, %c0_i32_0 : i32, i32
  }
  func.func @transform_2(%arg0: i32, %arg1: i32) -> (i32, i32) {
    %c0_i32 = arith.constant 0 : i32
    %c0_i32_0 = arith.constant 0 : i32
    %c0_i32_1 = arith.constant 0 : i32
    return %c0_i32, %c0_i32_0 : i32, i32
  }
  func.func @transform_3(%arg0: i32, %arg1: i32) -> (i32, i32) {
    %c0_i32 = arith.constant 0 : i32
    %c0_i32_0 = arith.constant 0 : i32
    %c0_i32_1 = arith.constant 0 : i32
    return %c0_i32, %c0_i32_0 : i32, i32
  }
  func.func @transform_4(%arg0: i32, %arg1: i32) -> (i32, i32) {
    %c0_i32 = arith.constant 0 : i32
    %c0_i32_0 = arith.constant 0 : i32
    %c0_i32_1 = arith.constant 0 : i32
    return %c0_i32, %c0_i32_0 : i32, i32
  }
  func.func @transform_5(%arg0: i32, %arg1: i32) -> (i32, i32, i32, i32) {
    %c0_i32 = arith.constant 0 : i32
    %c0_i32_0 = arith.constant 0 : i32
    %c0_i32_1 = arith.constant 0 : i32
    return %arg0, %c0_i32, %arg1, %c0_i32_0 : i32, i32, i32, i32
  }
  func.func @transform_6(%arg0: i32, %arg1: i32) -> (i32, i32, i32, i32) {
    %c0_i32 = arith.constant 0 : i32
    %c0_i32_0 = arith.constant 0 : i32
    %c0_i32_1 = arith.constant 0 : i32
    return %arg0, %c0_i32, %arg1, %c0_i32_0 : i32, i32, i32, i32
  }
  func.func @transform_7(%arg0: i32, %arg1: i32) -> (i32, i32, i32, i32) {
    %c0_i32 = arith.constant 0 : i32
    %c0_i32_0 = arith.constant 0 : i32
    %c0_i32_1 = arith.constant 0 : i32
    return %arg0, %c0_i32, %arg1, %c0_i32_0 : i32, i32, i32, i32
  }
}

module attributes {stable_mosaic.version = 11 : i64} {
  func.func @attn_kernel(%arg0: i32, %arg1: i32, %arg2: i32, %arg3: memref<1x4x8x8xbf16, #tpu.memory_space<vmem>>, %arg4: memref<1x4x8x8xbf16, #tpu.memory_space<vmem>>, %arg5: memref<1x4x8x8xbf16, #tpu.memory_space<vmem>>, %arg6: memref<1x8x32xf32, #tpu.memory_space<vmem>>, %arg7: memref<32x32xbf16, #tpu.memory_space<vmem>>, %arg8: memref<1x32xf32, #tpu.memory_space<vmem>>, %arg9: memref<1x8x32xf32, #tpu.memory_space<vmem>>, %arg10: memref<4x8x1xf32, #tpu.memory_space<vmem>>, %arg11: memref<4x8x1xf32, #tpu.memory_space<vmem>>, %arg12: memref<4x8x8xf32, #tpu.memory_space<vmem>>) attributes {dimension_semantics = [#tpu.dimension_semantics<parallel>, #tpu.dimension_semantics<parallel>, #tpu.dimension_semantics<arbitrary>], iteration_bounds = array<i64: 2, 1, 1>, scalar_prefetch = 0 : i64, scratch_operands = 3 : i64, tpu.core_type = #tpu.core_type<tc>, window_params = [{transform_indices = @transform_0, window_bounds = array<i64: 1, 4, 8, 8>}, {transform_indices = @transform_1, window_bounds = array<i64: 1, 4, 8, 8>}, {transform_indices = @transform_2, window_bounds = array<i64: 1, 4, 8, 8>}, {transform_indices = @transform_3, window_bounds = array<i64: 1, 8, 32>}, {pipeline_mode = #tpu.pipeline_mode<synchronous>, transform_indices = @transform_4, window_bounds = array<i64: 32, 32>}, {pipeline_mode = #tpu.pipeline_mode<synchronous>, transform_indices = @transform_5, window_bounds = array<i64: 1, 32>}, {transform_indices = @transform_6, window_bounds = array<i64: 1, 8, 32>}]} {
    %c0_i32 = arith.constant 0 : i32
    %0 = arith.cmpi eq, %arg2, %c0_i32 : i32
    %1 = arith.extui %0 : i1 to i32
    %c0_i32_0 = arith.constant 0 : i32
    %2 = arith.cmpi ne, %1, %c0_i32_0 : i32
    scf.if %2 {
      %cst = arith.constant 0xFF800000 : f32
      %9 = vector.broadcast %cst : f32 to vector<4x8x1xf32>
      %c0 = arith.constant 0 : index
      %c0_4 = arith.constant 0 : index
      %c0_5 = arith.constant 0 : index
      %10 = vector.load %arg10[%c0, %c0_4, %c0_5] : memref<4x8x1xf32, #tpu.memory_space<vmem>>, vector<4x8x1xf32>
      tpu.vector_store %arg10[%c0, %c0_4, %c0_5], %9 {strides = array<i32>} : memref<4x8x1xf32, #tpu.memory_space<vmem>>, vector<4x8x1xf32>,
      %cst_6 = arith.constant 0.000000e+00 : f32
      %11 = vector.broadcast %cst_6 : f32 to vector<4x8x1xf32>
      %c0_7 = arith.constant 0 : index
      %c0_8 = arith.constant 0 : index
      %c0_9 = arith.constant 0 : index
      %12 = vector.load %arg11[%c0_7, %c0_8, %c0_9] : memref<4x8x1xf32, #tpu.memory_space<vmem>>, vector<4x8x1xf32>
      tpu.vector_store %arg11[%c0_7, %c0_8, %c0_9], %11 {strides = array<i32>} : memref<4x8x1xf32, #tpu.memory_space<vmem>>, vector<4x8x1xf32>,
      %cst_10 = arith.constant 0.000000e+00 : f32
      %13 = vector.broadcast %cst_10 : f32 to vector<4x8x8xf32>
      %c0_11 = arith.constant 0 : index
      %c0_12 = arith.constant 0 : index
      %c0_13 = arith.constant 0 : index
      %14 = vector.load %arg12[%c0_11, %c0_12, %c0_13] : memref<4x8x8xf32, #tpu.memory_space<vmem>>, vector<4x8x8xf32>
      tpu.vector_store %arg12[%c0_11, %c0_12, %c0_13], %13 {strides = array<i32>} : memref<4x8x8xf32, #tpu.memory_space<vmem>>, vector<4x8x8xf32>,
    } else {
    }
    %3 = arith.cmpi sle, %arg2, %arg1 : i32
    %4 = arith.extui %3 : i1 to i32
    %c0_i32_1 = arith.constant 0 : i32
    %5 = arith.cmpi ne, %4, %c0_i32_1 : i32
    scf.if %5 {
      %c0 = arith.constant 0 : index
      %c0_4 = arith.constant 0 : index
      %c0_5 = arith.constant 0 : index
      %c0_6 = arith.constant 0 : index
      %9 = vector.load %arg3[%c0, %c0_4, %c0_5, %c0_6] : memref<1x4x8x8xbf16, #tpu.memory_space<vmem>>, vector<1x4x8x8xbf16>
      %10 = vector.shape_cast %9 : vector<1x4x8x8xbf16> to vector<4x8x8xbf16>
      %c0_7 = arith.constant 0 : index
      %c0_8 = arith.constant 0 : index
      %c0_9 = arith.constant 0 : index
      %c0_10 = arith.constant 0 : index
      %11 = vector.load %arg4[%c0_7, %c0_8, %c0_9, %c0_10] : memref<1x4x8x8xbf16, #tpu.memory_space<vmem>>, vector<1x4x8x8xbf16>
      %12 = vector.shape_cast %11 : vector<1x4x8x8xbf16> to vector<4x8x8xbf16>
      %c0_11 = arith.constant 0 : index
      %c0_12 = arith.constant 0 : index
      %c0_13 = arith.constant 0 : index
      %c0_14 = arith.constant 0 : index
      %13 = vector.load %arg5[%c0_11, %c0_12, %c0_13, %c0_14] : memref<1x4x8x8xbf16, #tpu.memory_space<vmem>>, vector<1x4x8x8xbf16>
      %14 = vector.shape_cast %13 : vector<1x4x8x8xbf16> to vector<4x8x8xbf16>
      "tpu.trace_start"() <{level = 10 : i32, message = "hqd,hkd->hqk"}> : () -> ()
      %cst = arith.constant dense<0.000000e+00> : vector<4x8x8xf32>
      %15 = tpu.matmul %10, %12, %cst {dimension_numbers = #tpu.dot_dimension_numbers<[2], [2], [1], [1], [0, 0, 0, 1, 1, 1], [0], [0]>} : vector<4x8x8xbf16>, vector<4x8x8xbf16>, vector<4x8x8xf32> -> vector<4x8x8xf32>
      "tpu.trace_stop"() : () -> ()
      %cst_15 = arith.constant 0.353553385 : f32
      %16 = vector.broadcast %cst_15 : f32 to vector<4x8x8xf32>
      %17 = arith.mulf %15, %16 : vector<4x8x8xf32>
      %c8_i32 = arith.constant 8 : i32
      %18 = arith.muli %arg1, %c8_i32 : i32
      %19 = tpu.iota {dimensions = array<i32: 0>} : vector<8x8xi32>
      %20 = vector.broadcast %18 : i32 to vector<8x8xi32>
      %21 = arith.addi %20, %19 : vector<8x8xi32>
      %c8_i32_16 = arith.constant 8 : i32
      %22 = arith.muli %arg2, %c8_i32_16 : i32
      %23 = tpu.iota {dimensions = array<i32: 1>} : vector<8x8xi32>
      %24 = vector.broadcast %22 : i32 to vector<8x8xi32>
      %25 = arith.addi %24, %23 : vector<8x8xi32>
      %26 = arith.cmpi sle, %25, %21 : vector<8x8xi32>
      %27 = vector.shape_cast %26 : vector<8x8xi1> to vector<1x8x8xi1>
      %cst_17 = arith.constant -1.000000e+30 : f32
      %28 = vector.shape_cast %27 : vector<1x8x8xi1> to vector<1x8x8xi1>
      %29 = vector.broadcast %28 : vector<1x8x8xi1> to vector<4x8x8xi1>
      %30 = vector.broadcast %cst_17 : f32 to vector<4x8x8xf32>
      %31 = arith.select %29, %17, %30 : vector<4x8x8xi1>, vector<4x8x8xf32>
      %c0_18 = arith.constant 0 : index
      %c0_19 = arith.constant 0 : index
      %c0_20 = arith.constant 0 : index
      %32 = vector.load %arg10[%c0_18, %c0_19, %c0_20] : memref<4x8x1xf32, #tpu.memory_space<vmem>>, vector<4x8x1xf32>
      %cst_21 = arith.constant dense<0xFF800000> : vector<4x8xf32>
      %33 = vector.multi_reduction <maximumf>, %31, %cst_21 [2] : vector<4x8x8xf32> to vector<4x8xf32>
      %34 = vector.shape_cast %33 : vector<4x8xf32> to vector<4x8x1xf32>
      %35 = arith.maximumf %32, %34 : vector<4x8x1xf32>
      %36 = arith.subf %32, %35 : vector<4x8x1xf32>
      %37 = math.exp %36 : vector<4x8x1xf32>
      %38 = vector.broadcast %35 : vector<4x8x1xf32> to vector<4x8x8xf32>
      %39 = arith.subf %31, %38 : vector<4x8x8xf32>
      %40 = math.exp %39 : vector<4x8x8xf32>
      %c0_22 = arith.constant 0 : index
      %c0_23 = arith.constant 0 : index
      %c0_24 = arith.constant 0 : index
      %41 = vector.load %arg11[%c0_22, %c0_23, %c0_24] : memref<4x8x1xf32, #tpu.memory_space<vmem>>, vector<4x8x1xf32>
      %42 = arith.mulf %37, %41 : vector<4x8x1xf32>
      %cst_25 = arith.constant dense<0.000000e+00> : vector<4x8xf32>
      %43 = vector.multi_reduction <add>, %40, %cst_25 [2] : vector<4x8x8xf32> to vector<4x8xf32>
      %44 = vector.shape_cast %43 : vector<4x8xf32> to vector<4x8x1xf32>
      %45 = arith.addf %42, %44 : vector<4x8x1xf32>
      %c0_26 = arith.constant 0 : index
      %c0_27 = arith.constant 0 : index
      %c0_28 = arith.constant 0 : index
      %46 = vector.load %arg11[%c0_26, %c0_27, %c0_28] : memref<4x8x1xf32, #tpu.memory_space<vmem>>, vector<4x8x1xf32>
      tpu.vector_store %arg11[%c0_26, %c0_27, %c0_28], %45 {strides = array<i32>} : memref<4x8x1xf32, #tpu.memory_space<vmem>>, vector<4x8x1xf32>,
      %c0_29 = arith.constant 0 : index
      %c0_30 = arith.constant 0 : index
      %c0_31 = arith.constant 0 : index
      %47 = vector.load %arg12[%c0_29, %c0_30, %c0_31] : memref<4x8x8xf32, #tpu.memory_space<vmem>>, vector<4x8x8xf32>
      %48 = vector.broadcast %37 : vector<4x8x1xf32> to vector<4x8x8xf32>
      %49 = arith.mulf %48, %47 : vector<4x8x8xf32>
      %50 = arith.truncf %40 : vector<4x8x8xf32> to vector<4x8x8xbf16>
      "tpu.trace_start"() <{level = 10 : i32, message = "hqk,hkd->hqd"}> : () -> ()
      %cst_32 = arith.constant dense<0.000000e+00> : vector<4x8x8xf32>
      %51 = tpu.matmul %50, %14, %cst_32 {dimension_numbers = #tpu.dot_dimension_numbers<[2], [1], [1], [2], [0, 0, 0, 1, 1, 2], [0], [0]>} : vector<4x8x8xbf16>, vector<4x8x8xbf16>, vector<4x8x8xf32> -> vector<4x8x8xf32>
      "tpu.trace_stop"() : () -> ()
      %52 = arith.addf %49, %51 : vector<4x8x8xf32>
      %c0_33 = arith.constant 0 : index
      %c0_34 = arith.constant 0 : index
      %c0_35 = arith.constant 0 : index
      %53 = vector.load %arg12[%c0_33, %c0_34, %c0_35] : memref<4x8x8xf32, #tpu.memory_space<vmem>>, vector<4x8x8xf32>
      tpu.vector_store %arg12[%c0_33, %c0_34, %c0_35], %52 {strides = array<i32>} : memref<4x8x8xf32, #tpu.memory_space<vmem>>, vector<4x8x8xf32>,
      %c0_36 = arith.constant 0 : index
      %c0_37 = arith.constant 0 : index
      %c0_38 = arith.constant 0 : index
      %54 = vector.load %arg10[%c0_36, %c0_37, %c0_38] : memref<4x8x1xf32, #tpu.memory_space<vmem>>, vector<4x8x1xf32>
      tpu.vector_store %arg10[%c0_36, %c0_37, %c0_38], %35 {strides = array<i32>} : memref<4x8x1xf32, #tpu.memory_space<vmem>>, vector<4x8x1xf32>,
    } else {
    }
    %c0_i32_2 = arith.constant 0 : i32
    %6 = arith.cmpi eq, %arg2, %c0_i32_2 : i32
    %7 = arith.extui %6 : i1 to i32
    %c0_i32_3 = arith.constant 0 : i32
    %8 = arith.cmpi ne, %7, %c0_i32_3 : i32
    scf.if %8 {
      %c0 = arith.constant 0 : index
      %c0_4 = arith.constant 0 : index
      %c0_5 = arith.constant 0 : index
      %9 = vector.load %arg11[%c0, %c0_4, %c0_5] : memref<4x8x1xf32, #tpu.memory_space<vmem>>, vector<4x8x1xf32>
      %10 = tpu.reciprocal %9 {approx = true} : vector<4x8x1xf32> -> vector<4x8x1xf32>
      %c0_6 = arith.constant 0 : index
      %c0_7 = arith.constant 0 : index
      %c0_8 = arith.constant 0 : index
      %11 = vector.load %arg12[%c0_6, %c0_7, %c0_8] : memref<4x8x8xf32, #tpu.memory_space<vmem>>, vector<4x8x8xf32>
      %12 = vector.broadcast %10 : vector<4x8x1xf32> to vector<4x8x8xf32>
      %13 = arith.mulf %11, %12 : vector<4x8x8xf32>
      %14 = tpu.transpose %13, [1, 0, 2] : vector<4x8x8xf32> -> vector<8x4x8xf32>
      %15 = vector.shape_cast %14 : vector<8x4x8xf32> to vector<8x32xf32>
      %16 = arith.truncf %15 : vector<8x32xf32> to vector<8x32xbf16>
      %c0_9 = arith.constant 0 : index
      %c0_10 = arith.constant 0 : index
      %17 = vector.load %arg7[%c0_9, %c0_10] : memref<32x32xbf16, #tpu.memory_space<vmem>>, vector<32x32xbf16>
      %cst = arith.constant dense<0.000000e+00> : vector<8x32xf32>
      %18 = tpu.matmul %16, %17, %cst {dimension_numbers = #tpu.dot_dimension_numbers<[1], [0], [0], [1], [0, 0, 1, 1], [], []>} : vector<8x32xbf16>, vector<32x32xbf16>, vector<8x32xf32> -> vector<8x32xf32>
      %c0_11 = arith.constant 0 : index
      %c0_12 = arith.constant 0 : index
      %19 = vector.load %arg8[%c0_11, %c0_12] : memref<1x32xf32, #tpu.memory_space<vmem>>, vector<1x32xf32>
      %20 = vector.broadcast %19 : vector<1x32xf32> to vector<8x32xf32>
      %21 = arith.addf %18, %20 : vector<8x32xf32>
      %c0_13 = arith.constant 0 : index
      %c0_14 = arith.constant 0 : index
      %c0_15 = arith.constant 0 : index
      %22 = vector.load %arg6[%c0_13, %c0_14, %c0_15] : memref<1x8x32xf32, #tpu.memory_space<vmem>>, vector<1x8x32xf32>
      %23 = vector.shape_cast %22 : vector<1x8x32xf32> to vector<8x32xf32>
      %24 = arith.addf %23, %21 : vector<8x32xf32>
      %c0_16 = arith.constant 0 : index
      %c0_17 = arith.constant 0 : index
      %c0_18 = arith.constant 0 : index
      %25 = vector.load %arg9[%c0_16, %c0_17, %c0_18] : memref<1x8x32xf32, #tpu.memory_space<vmem>>, vector<1x8x32xf32>
      %26 = vector.shape_cast %25 : vector<1x8x32xf32> to vector<8x32xf32>
      %27 = vector.shape_cast %24 : vector<8x32xf32> to vector<1x8x32xf32>
      tpu.vector_store %arg9[%c0_16, %c0_17, %c0_18], %27 {strides = array<i32>} : memref<1x8x32xf32, #tpu.memory_space<vmem>>, vector<1x8x32xf32>,
    } else {
    }
    return
  }
  func.func @transform_0(%arg0: i32, %arg1: i32, %arg2: i32) -> (i32, i32, i32, i32) {
    %c0_i32 = arith.constant 0 : i32
    %c0_i32_0 = arith.constant 0 : i32
    %c0_i32_1 = arith.constant 0 : i32
    return %arg0, %c0_i32, %arg1, %c0_i32_0 : i32, i32, i32, i32
  }
  func.func @transform_1(%arg0: i32, %arg1: i32, %arg2: i32) -> (i32, i32, i32, i32) {
    %0 = arith.minsi %arg2, %arg1 : i32
    %c0_i32 = arith.constant 0 : i32
    %c0_i32_0 = arith.constant 0 : i32
    %c0_i32_1 = arith.constant 0 : i32
    return %arg0, %c0_i32, %0, %c0_i32_0 : i32, i32, i32, i32
  }
  func.func @transform_2(%arg0: i32, %arg1: i32, %arg2: i32) -> (i32, i32, i32, i32) {
    %0 = arith.minsi %arg2, %arg1 : i32
    %c0_i32 = arith.constant 0 : i32
    %c0_i32_0 = arith.constant 0 : i32
    %c0_i32_1 = arith.constant 0 : i32
    return %arg0, %c0_i32, %0, %c0_i32_0 : i32, i32, i32, i32
  }
  func.func @transform_3(%arg0: i32, %arg1: i32, %arg2: i32) -> (i32, i32, i32) {
    %c0_i32 = arith.constant 0 : i32
    %c0_i32_0 = arith.constant 0 : i32
    return %arg0, %arg1, %c0_i32 : i32, i32, i32
  }
  func.func @transform_4(%arg0: i32, %arg1: i32, %arg2: i32) -> (i32, i32) {
    %c0_i32 = arith.constant 0 : i32
    %c0_i32_0 = arith.constant 0 : i32
    %c0_i32_1 = arith.constant 0 : i32
    return %c0_i32, %c0_i32_0 : i32, i32
  }
  func.func @transform_5(%arg0: i32, %arg1: i32, %arg2: i32) -> (i32, i32) {
    %c0_i32 = arith.constant 0 : i32
    %c0_i32_0 = arith.constant 0 : i32
    %c0_i32_1 = arith.constant 0 : i32
    return %c0_i32, %c0_i32_0 : i32, i32
  }
  func.func @transform_6(%arg0: i32, %arg1: i32, %arg2: i32) -> (i32, i32, i32) {
    %c0_i32 = arith.constant 0 : i32
    %c0_i32_0 = arith.constant 0 : i32
    return %arg0, %arg1, %c0_i32 : i32, i32, i32
  }
}

module attributes {stable_mosaic.version = 11 : i64} {
  func.func @mlp_kernel(%arg0: i32, %arg1: i32, %arg2: memref<1x8x32xf32, #tpu.memory_space<vmem>>, %arg3: memref<1x32xf32, #tpu.memory_space<vmem>>, %arg4: memref<1x32xf32, #tpu.memory_space<vmem>>, %arg5: memref<32x128xbf16, #tpu.memory_space<vmem>>, %arg6: memref<1x128xf32, #tpu.memory_space<vmem>>, %arg7: memref<128x32xbf16, #tpu.memory_space<vmem>>, %arg8: memref<1x32xf32, #tpu.memory_space<vmem>>, %arg9: memref<1x32xf32, #tpu.memory_space<vmem>>, %arg10: memref<1x32xf32, #tpu.memory_space<vmem>>, %arg11: memref<1x8x32xf32, #tpu.memory_space<vmem>>) attributes {dimension_semantics = [#tpu.dimension_semantics<parallel>, #tpu.dimension_semantics<parallel>], iteration_bounds = array<i64: 2, 1>, scalar_prefetch = 0 : i64, scratch_operands = 0 : i64, tpu.core_type = #tpu.core_type<tc>, window_params = [{transform_indices = @transform_0, window_bounds = array<i64: 1, 8, 32>}, {pipeline_mode = #tpu.pipeline_mode<synchronous>, transform_indices = @transform_1, window_bounds = array<i64: 1, 32>}, {pipeline_mode = #tpu.pipeline_mode<synchronous>, transform_indices = @transform_2, window_bounds = array<i64: 1, 32>}, {pipeline_mode = #tpu.pipeline_mode<synchronous>, transform_indices = @transform_3, window_bounds = array<i64: 32, 128>}, {pipeline_mode = #tpu.pipeline_mode<synchronous>, transform_indices = @transform_4, window_bounds = array<i64: 1, 128>}, {pipeline_mode = #tpu.pipeline_mode<synchronous>, transform_indices = @transform_5, window_bounds = array<i64: 128, 32>}, {pipeline_mode = #tpu.pipeline_mode<synchronous>, transform_indices = @transform_6, window_bounds = array<i64: 1, 32>}, {pipeline_mode = #tpu.pipeline_mode<synchronous>, transform_indices = @transform_7, window_bounds = array<i64: 1, 32>}, {pipeline_mode = #tpu.pipeline_mode<synchronous>, transform_indices = @transform_8, window_bounds = array<i64: 1, 32>}, {transform_indices = @transform_9, window_bounds = array<i64: 1, 8, 32>}]} {
    %c0 = arith.constant 0 : index
    %c0_0 = arith.constant 0 : index
    %c0_1 = arith.constant 0 : index
    %0 = vector.load %arg2[%c0, %c0_0, %c0_1] : memref<1x8x32xf32, #tpu.memory_space<vmem>>, vector<1x8x32xf32>
    %1 = vector.shape_cast %0 : vector<1x8x32xf32> to vector<8x32xf32>
    %c0_2 = arith.constant 0 : index
    %c0_3 = arith.constant 0 : index
    %2 = vector.load %arg3[%c0_2, %c0_3] : memref<1x32xf32, #tpu.memory_space<vmem>>, vector<1x32xf32>
    %c0_4 = arith.constant 0 : index
    %c0_5 = arith.constant 0 : index
    %3 = vector.load %arg4[%c0_4, %c0_5] : memref<1x32xf32, #tpu.memory_space<vmem>>, vector<1x32xf32>
    %cst = arith.constant dense<0.000000e+00> : vector<8xf32>
    %4 = vector.multi_reduction <add>, %1, %cst [1] : vector<8x32xf32> to vector<8xf32>
    %5 = vector.shape_cast %4 : vector<8xf32> to vector<8x1xf32>
    %cst_6 = arith.constant 3.200000e+01 : f32
    %6 = vector.broadcast %cst_6 : f32 to vector<8x1xf32>
    %7 = arith.divf %5, %6 : vector<8x1xf32>
    %8 = vector.broadcast %7 : vector<8x1xf32> to vector<8x32xf32>
    %9 = arith.subf %1, %8 : vector<8x32xf32>
    %10 = arith.mulf %9, %9 : vector<8x32xf32>
    %cst_7 = arith.constant dense<0.000000e+00> : vector<8xf32>
    %11 = vector.multi_reduction <add>, %10, %cst_7 [1] : vector<8x32xf32> to vector<8xf32>
    %12 = vector.shape_cast %11 : vector<8xf32> to vector<8x1xf32>
    %cst_8 = arith.constant 3.200000e+01 : f32
    %13 = vector.broadcast %cst_8 : f32 to vector<8x1xf32>
    %14 = arith.divf %12, %13 : vector<8x1xf32>
    %15 = vector.broadcast %7 : vector<8x1xf32> to vector<8x32xf32>
    %16 = arith.subf %1, %15 : vector<8x32xf32>
    %cst_9 = arith.constant 9.99999974E-6 : f32
    %17 = vector.broadcast %cst_9 : f32 to vector<8x1xf32>
    %18 = arith.addf %14, %17 : vector<8x1xf32>
    %19 = math.rsqrt %18 : vector<8x1xf32>
    %20 = vector.broadcast %19 : vector<8x1xf32> to vector<8x32xf32>
    %21 = arith.mulf %16, %20 : vector<8x32xf32>
    %22 = vector.broadcast %2 : vector<1x32xf32> to vector<8x32xf32>
    %23 = arith.mulf %21, %22 : vector<8x32xf32>
    %24 = vector.broadcast %3 : vector<1x32xf32> to vector<8x32xf32>
    %25 = arith.addf %23, %24 : vector<8x32xf32>
    %26 = arith.truncf %25 : vector<8x32xf32> to vector<8x32xbf16>
    %c0_10 = arith.constant 0 : index
    %c0_11 = arith.constant 0 : index
    %27 = vector.load %arg5[%c0_10, %c0_11] : memref<32x128xbf16, #tpu.memory_space<vmem>>, vector<32x128xbf16>
    %cst_12 = arith.constant dense<0.000000e+00> : vector<8x128xf32>
    %28 = tpu.matmul %26, %27, %cst_12 {dimension_numbers = #tpu.dot_dimension_numbers<[1], [0], [0], [1], [0, 0, 1, 1], [], []>} : vector<8x32xbf16>, vector<32x128xbf16>, vector<8x128xf32> -> vector<8x128xf32>
    %c0_13 = arith.constant 0 : index
    %c0_14 = arith.constant 0 : index
    %29 = vector.load %arg6[%c0_13, %c0_14] : memref<1x128xf32, #tpu.memory_space<vmem>>, vector<1x128xf32>
    %30 = vector.broadcast %29 : vector<1x128xf32> to vector<8x128xf32>
    %31 = arith.addf %28, %30 : vector<8x128xf32>
    %cst_15 = arith.constant 5.000000e-01 : f32
    %32 = vector.broadcast %cst_15 : f32 to vector<8x128xf32>
    %33 = arith.mulf %32, %31 : vector<8x128xf32>
    %cst_16 = arith.constant 4.471500e-02 : f32
    %34 = vector.broadcast %cst_16 : f32 to vector<8x128xf32>
    %35 = arith.mulf %34, %31 : vector<8x128xf32>
    %36 = arith.mulf %35, %31 : vector<8x128xf32>
    %37 = arith.mulf %36, %31 : vector<8x128xf32>
    %38 = arith.addf %31, %37 : vector<8x128xf32>
    %cst_17 = arith.constant 0.797884583 : f32
    %39 = vector.broadcast %cst_17 : f32 to vector<8x128xf32>
    %40 = arith.mulf %39, %38 : vector<8x128xf32>
    %41 = math.tanh %40 : vector<8x128xf32>
    %cst_18 = arith.constant 1.000000e+00 : f32
    %42 = vector.broadcast %cst_18 : f32 to vector<8x128xf32>
    %43 = arith.addf %42, %41 : vector<8x128xf32>
    %44 = arith.mulf %33, %43 : vector<8x128xf32>
    %45 = arith.truncf %44 : vector<8x128xf32> to vector<8x128xbf16>
    %c0_19 = arith.constant 0 : index
    %c0_20 = arith.constant 0 : index
    %46 = vector.load %arg7[%c0_19, %c0_20] : memref<128x32xbf16, #tpu.memory_space<vmem>>, vector<128x32xbf16>
    %cst_21 = arith.constant dense<0.000000e+00> : vector<8x32xf32>
    %47 = tpu.matmul %45, %46, %cst_21 {dimension_numbers = #tpu.dot_dimension_numbers<[1], [0], [0], [1], [0, 0, 1, 1], [], []>} : vector<8x128xbf16>, vector<128x32xbf16>, vector<8x32xf32> -> vector<8x32xf32>
    %c0_22 = arith.constant 0 : index
    %c0_23 = arith.constant 0 : index
    %48 = vector.load %arg8[%c0_22, %c0_23] : memref<1x32xf32, #tpu.memory_space<vmem>>, vector<1x32xf32>
    %49 = vector.broadcast %48 : vector<1x32xf32> to vector<8x32xf32>
    %50 = arith.addf %47, %49 : vector<8x32xf32>
    %51 = arith.addf %1, %50 : vector<8x32xf32>
    %c0_24 = arith.constant 0 : index
    %c0_25 = arith.constant 0 : index
    %c0_26 = arith.constant 0 : index
    %52 = vector.load %arg11[%c0_24, %c0_25, %c0_26] : memref<1x8x32xf32, #tpu.memory_space<vmem>>, vector<1x8x32xf32>
    %53 = vector.shape_cast %52 : vector<1x8x32xf32> to vector<8x32xf32>
    %54 = vector.shape_cast %51 : vector<8x32xf32> to vector<1x8x32xf32>
    tpu.vector_store %arg11[%c0_24, %c0_25, %c0_26], %54 {strides = array<i32>} : memref<1x8x32xf32, #tpu.memory_space<vmem>>, vector<1x8x32xf32>,
    return
  }
  func.func @transform_0(%arg0: i32, %arg1: i32) -> (i32, i32, i32) {
    %c0_i32 = arith.constant 0 : i32
    %c0_i32_0 = arith.constant 0 : i32
    return %arg0, %arg1, %c0_i32 : i32, i32, i32
  }
  func.func @transform_1(%arg0: i32, %arg1: i32) -> (i32, i32) {
    %c0_i32 = arith.constant 0 : i32
    %c0_i32_0 = arith.constant 0 : i32
    %c0_i32_1 = arith.constant 0 : i32
    return %c0_i32, %c0_i32_0 : i32, i32
  }
  func.func @transform_2(%arg0: i32, %arg1: i32) -> (i32, i32) {
    %c0_i32 = arith.constant 0 : i32
    %c0_i32_0 = arith.constant 0 : i32
    %c0_i32_1 = arith.constant 0 : i32
    return %c0_i32, %c0_i32_0 : i32, i32
  }
  func.func @transform_3(%arg0: i32, %arg1: i32) -> (i32, i32) {
    %c0_i32 = arith.constant 0 : i32
    %c0_i32_0 = arith.constant 0 : i32
    %c0_i32_1 = arith.constant 0 : i32
    return %c0_i32, %c0_i32_0 : i32, i32
  }
  func.func @transform_4(%arg0: i32, %arg1: i32) -> (i32, i32) {
    %c0_i32 = arith.constant 0 : i32
    %c0_i32_0 = arith.constant 0 : i32
    %c0_i32_1 = arith.constant 0 : i32
    return %c0_i32, %c0_i32_0 : i32, i32
  }
  func.func @transform_5(%arg0: i32, %arg1: i32) -> (i32, i32) {
    %c0_i32 = arith.constant 0 : i32
    %c0_i32_0 = arith.constant 0 : i32
    %c0_i32_1 = arith.constant 0 : i32
    return %c0_i32, %c0_i32_0 : i32, i32
  }
  func.func @transform_6(%arg0: i32, %arg1: i32) -> (i32, i32) {
    %c0_i32 = arith.constant 0 : i32
    %c0_i32_0 = arith.constant 0 : i32
    %c0_i32_1 = arith.constant 0 : i32
    return %c0_i32, %c0_i32_0 : i32, i32
  }
  func.func @transform_7(%arg0: i32, %arg1: i32) -> (i32, i32) {
    %c0_i32 = arith.constant 0 : i32
    %c0_i32_0 = arith.constant 0 : i32
    %c0_i32_1 = arith.constant 0 : i32
    return %c0_i32, %c0_i32_0 : i32, i32
  }
  func.func @transform_8(%arg0: i32, %arg1: i32) -> (i32, i32) {
    %c0_i32 = arith.constant 0 : i32
    %c0_i32_0 = arith.constant 0 : i32
    %c0_i32_1 = arith.constant 0 : i32
    return %c0_i32, %c0_i32_0 : i32, i32
  }
  func.func @transform_9(%arg0: i32, %arg1: i32) -> (i32, i32, i32) {
    %c0_i32 = arith.constant 0 : i32
    %c0_i32_0 = arith.constant 0 : i32
    return %arg0, %arg1, %c0_i32 : i32, i32, i32
  }
}

module attributes {stable_mosaic.version = 11 : i64} {
  func.func @mlp_kernel(%arg0: i32, %arg1: i32, %arg2: memref<1x8x32xf32, #tpu.memory_space<vmem>>, %arg3: memref<1x32xf32, #tpu.memory_space<vmem>>, %arg4: memref<1x32xf32, #tpu.memory_space<vmem>>, %arg5: memref<32x128xbf16, #tpu.memory_space<vmem>>, %arg6: memref<1x128xf32, #tpu.memory_space<vmem>>, %arg7: memref<128x32xbf16, #tpu.memory_space<vmem>>, %arg8: memref<1x32xf32, #tpu.memory_space<vmem>>, %arg9: memref<1x32xf32, #tpu.memory_space<vmem>>, %arg10: memref<1x32xf32, #tpu.memory_space<vmem>>, %arg11: memref<1x8x32xf32, #tpu.memory_space<vmem>>) attributes {dimension_semantics = [#tpu.dimension_semantics<parallel>, #tpu.dimension_semantics<parallel>], iteration_bounds = array<i64: 2, 1>, scalar_prefetch = 0 : i64, scratch_operands = 0 : i64, tpu.core_type = #tpu.core_type<tc>, window_params = [{transform_indices = @transform_0, window_bounds = array<i64: 1, 8, 32>}, {pipeline_mode = #tpu.pipeline_mode<synchronous>, transform_indices = @transform_1, window_bounds = array<i64: 1, 32>}, {pipeline_mode = #tpu.pipeline_mode<synchronous>, transform_indices = @transform_2, window_bounds = array<i64: 1, 32>}, {pipeline_mode = #tpu.pipeline_mode<synchronous>, transform_indices = @transform_3, window_bounds = array<i64: 32, 128>}, {pipeline_mode = #tpu.pipeline_mode<synchronous>, transform_indices = @transform_4, window_bounds = array<i64: 1, 128>}, {pipeline_mode = #tpu.pipeline_mode<synchronous>, transform_indices = @transform_5, window_bounds = array<i64: 128, 32>}, {pipeline_mode = #tpu.pipeline_mode<synchronous>, transform_indices = @transform_6, window_bounds = array<i64: 1, 32>}, {pipeline_mode = #tpu.pipeline_mode<synchronous>, transform_indices = @transform_7, window_bounds = array<i64: 1, 32>}, {pipeline_mode = #tpu.pipeline_mode<synchronous>, transform_indices = @transform_8, window_bounds = array<i64: 1, 32>}, {transform_indices = @transform_9, window_bounds = array<i64: 1, 8, 32>}]} {
    %c0 = arith.constant 0 : index
    %c0_0 = arith.constant 0 : index
    %c0_1 = arith.constant 0 : index
    %0 = vector.load %arg2[%c0, %c0_0, %c0_1] : memref<1x8x32xf32, #tpu.memory_space<vmem>>, vector<1x8x32xf32>
    %1 = vector.shape_cast %0 : vector<1x8x32xf32> to vector<8x32xf32>
    %c0_2 = arith.constant 0 : index
    %c0_3 = arith.constant 0 : index
    %2 = vector.load %arg3[%c0_2, %c0_3] : memref<1x32xf32, #tpu.memory_space<vmem>>, vector<1x32xf32>
    %c0_4 = arith.constant 0 : index
    %c0_5 = arith.constant 0 : index
    %3 = vector.load %arg4[%c0_4, %c0_5] : memref<1x32xf32, #tpu.memory_space<vmem>>, vector<1x32xf32>
    %cst = arith.constant dense<0.000000e+00> : vector<8xf32>
    %4 = vector.multi_reduction <add>, %1, %cst [1] : vector<8x32xf32> to vector<8xf32>
    %5 = vector.shape_cast %4 : vector<8xf32> to vector<8x1xf32>
    %cst_6 = arith.constant 3.200000e+01 : f32
    %6 = vector.broadcast %cst_6 : f32 to vector<8x1xf32>
    %7 = arith.divf %5, %6 : vector<8x1xf32>
    %8 = vector.broadcast %7 : vector<8x1xf32> to vector<8x32xf32>
    %9 = arith.subf %1, %8 : vector<8x32xf32>
    %10 = arith.mulf %9, %9 : vector<8x32xf32>
    %cst_7 = arith.constant dense<0.000000e+00> : vector<8xf32>
    %11 = vector.multi_reduction <add>, %10, %cst_7 [1] : vector<8x32xf32> to vector<8xf32>
    %12 = vector.shape_cast %11 : vector<8xf32> to vector<8x1xf32>
    %cst_8 = arith.constant 3.200000e+01 : f32
    %13 = vector.broadcast %cst_8 : f32 to vector<8x1xf32>
    %14 = arith.divf %12, %13 : vector<8x1xf32>
    %15 = vector.broadcast %7 : vector<8x1xf32> to vector<8x32xf32>
    %16 = arith.subf %1, %15 : vector<8x32xf32>
    %cst_9 = arith.constant 9.99999974E-6 : f32
    %17 = vector.broadcast %cst_9 : f32 to vector<8x1xf32>
    %18 = arith.addf %14, %17 : vector<8x1xf32>
    %19 = math.rsqrt %18 : vector<8x1xf32>
    %20 = vector.broadcast %19 : vector<8x1xf32> to vector<8x32xf32>
    %21 = arith.mulf %16, %20 : vector<8x32xf32>
    %22 = vector.broadcast %2 : vector<1x32xf32> to vector<8x32xf32>
    %23 = arith.mulf %21, %22 : vector<8x32xf32>
    %24 = vector.broadcast %3 : vector<1x32xf32> to vector<8x32xf32>
    %25 = arith.addf %23, %24 : vector<8x32xf32>
    %26 = arith.truncf %25 : vector<8x32xf32> to vector<8x32xbf16>
    %c0_10 = arith.constant 0 : index
    %c0_11 = arith.constant 0 : index
    %27 = vector.load %arg5[%c0_10, %c0_11] : memref<32x128xbf16, #tpu.memory_space<vmem>>, vector<32x128xbf16>
    %cst_12 = arith.constant dense<0.000000e+00> : vector<8x128xf32>
    %28 = tpu.matmul %26, %27, %cst_12 {dimension_numbers = #tpu.dot_dimension_numbers<[1], [0], [0], [1], [0, 0, 1, 1], [], []>} : vector<8x32xbf16>, vector<32x128xbf16>, vector<8x128xf32> -> vector<8x128xf32>
    %c0_13 = arith.constant 0 : index
    %c0_14 = arith.constant 0 : index
    %29 = vector.load %arg6[%c0_13, %c0_14] : memref<1x128xf32, #tpu.memory_space<vmem>>, vector<1x128xf32>
    %30 = vector.broadcast %29 : vector<1x128xf32> to vector<8x128xf32>
    %31 = arith.addf %28, %30 : vector<8x128xf32>
    %cst_15 = arith.constant 5.000000e-01 : f32
    %32 = vector.broadcast %cst_15 : f32 to vector<8x128xf32>
    %33 = arith.mulf %32, %31 : vector<8x128xf32>
    %cst_16 = arith.constant 4.471500e-02 : f32
    %34 = vector.broadcast %cst_16 : f32 to vector<8x128xf32>
    %35 = arith.mulf %34, %31 : vector<8x128xf32>
    %36 = arith.mulf %35, %31 : vector<8x128xf32>
    %37 = arith.mulf %36, %31 : vector<8x128xf32>
    %38 = arith.addf %31, %37 : vector<8x128xf32>
    %cst_17 = arith.constant 0.797884583 : f32
    %39 = vector.broadcast %cst_17 : f32 to vector<8x128xf32>
    %40 = arith.mulf %39, %38 : vector<8x128xf32>
    %41 = math.tanh %40 : vector<8x128xf32>
    %cst_18 = arith.constant 1.000000e+00 : f32
    %42 = vector.broadcast %cst_18 : f32 to vector<8x128xf32>
    %43 = arith.addf %42, %41 : vector<8x128xf32>
    %44 = arith.mulf %33, %43 : vector<8x128xf32>
    %45 = arith.truncf %44 : vector<8x128xf32> to vector<8x128xbf16>
    %c0_19 = arith.constant 0 : index
    %c0_20 = arith.constant 0 : index
    %46 = vector.load %arg7[%c0_19, %c0_20] : memref<128x32xbf16, #tpu.memory_space<vmem>>, vector<128x32xbf16>
    %cst_21 = arith.constant dense<0.000000e+00> : vector<8x32xf32>
    %47 = tpu.matmul %45, %46, %cst_21 {dimension_numbers = #tpu.dot_dimension_numbers<[1], [0], [0], [1], [0, 0, 1, 1], [], []>} : vector<8x128xbf16>, vector<128x32xbf16>, vector<8x32xf32> -> vector<8x32xf32>
    %c0_22 = arith.constant 0 : index
    %c0_23 = arith.constant 0 : index
    %48 = vector.load %arg8[%c0_22, %c0_23] : memref<1x32xf32, #tpu.memory_space<vmem>>, vector<1x32xf32>
    %49 = vector.broadcast %48 : vector<1x32xf32> to vector<8x32xf32>
    %50 = arith.addf %47, %49 : vector<8x32xf32>
    %51 = arith.addf %1, %50 : vector<8x32xf32>
    %c0_24 = arith.constant 0 : index
    %c0_25 = arith.constant 0 : index
    %52 = vector.load %arg9[%c0_24, %c0_25] : memref<1x32xf32, #tpu.memory_space<vmem>>, vector<1x32xf32>
    %c0_26 = arith.constant 0 : index
    %c0_27 = arith.constant 0 : index
    %53 = vector.load %arg10[%c0_26, %c0_27] : memref<1x32xf32, #tpu.memory_space<vmem>>, vector<1x32xf32>
    %cst_28 = arith.constant dense<0.000000e+00> : vector<8xf32>
    %54 = vector.multi_reduction <add>, %51, %cst_28 [1] : vector<8x32xf32> to vector<8xf32>
    %55 = vector.shape_cast %54 : vector<8xf32> to vector<8x1xf32>
    %cst_29 = arith.constant 3.200000e+01 : f32
    %56 = vector.broadcast %cst_29 : f32 to vector<8x1xf32>
    %57 = arith.divf %55, %56 : vector<8x1xf32>
    %58 = vector.broadcast %57 : vector<8x1xf32> to vector<8x32xf32>
    %59 = arith.subf %51, %58 : vector<8x32xf32>
    %60 = arith.mulf %59, %59 : vector<8x32xf32>
    %cst_30 = arith.constant dense<0.000000e+00> : vector<8xf32>
    %61 = vector.multi_reduction <add>, %60, %cst_30 [1] : vector<8x32xf32> to vector<8xf32>
    %62 = vector.shape_cast %61 : vector<8xf32> to vector<8x1xf32>
    %cst_31 = arith.constant 3.200000e+01 : f32
    %63 = vector.broadcast %cst_31 : f32 to vector<8x1xf32>
    %64 = arith.divf %62, %63 : vector<8x1xf32>
    %65 = vector.broadcast %57 : vector<8x1xf32> to vector<8x32xf32>
    %66 = arith.subf %51, %65 : vector<8x32xf32>
    %cst_32 = arith.constant 9.99999974E-6 : f32
    %67 = vector.broadcast %cst_32 : f32 to vector<8x1xf32>
    %68 = arith.addf %64, %67 : vector<8x1xf32>
    %69 = math.rsqrt %68 : vector<8x1xf32>
    %70 = vector.broadcast %69 : vector<8x1xf32> to vector<8x32xf32>
    %71 = arith.mulf %66, %70 : vector<8x32xf32>
    %72 = vector.broadcast %52 : vector<1x32xf32> to vector<8x32xf32>
    %73 = arith.mulf %71, %72 : vector<8x32xf32>
    %74 = vector.broadcast %53 : vector<1x32xf32> to vector<8x32xf32>
    %75 = arith.addf %73, %74 : vector<8x32xf32>
    %c0_33 = arith.constant 0 : index
    %c0_34 = arith.constant 0 : index
    %c0_35 = arith.constant 0 : index
    %76 = vector.load %arg11[%c0_33, %c0_34, %c0_35] : memref<1x8x32xf32, #tpu.memory_space<vmem>>, vector<1x8x32xf32>
    %77 = vector.shape_cast %76 : vector<1x8x32xf32> to vector<8x32xf32>
    %78 = vector.shape_cast %75 : vector<8x32xf32> to vector<1x8x32xf32>
    tpu.vector_store %arg11[%c0_33, %c0_34, %c0_35], %78 {strides = array<i32>} : memref<1x8x32xf32, #tpu.memory_space<vmem>>, vector<1x8x32xf32>,
    return
  }
  func.func @transform_0(%arg0: i32, %arg1: i32) -> (i32, i32, i32) {
    %c0_i32 = arith.constant 0 : i32
    %c0_i32_0 = arith.constant 0 : i32
    return %arg0, %arg1, %c0_i32 : i32, i32, i32
  }
  func.func @transform_1(%arg0: i32, %arg1: i32) -> (i32, i32) {
    %c0_i32 = arith.constant 0 : i32
    %c0_i32_0 = arith.constant 0 : i32
    %c0_i32_1 = arith.constant 0 : i32
    return %c0_i32, %c0_i32_0 : i32, i32
  }
  func.func @transform_2(%arg0: i32, %arg1: i32) -> (i32, i32) {
    %c0_i32 = arith.constant 0 : i32
    %c0_i32_0 = arith.constant 0 : i32
    %c0_i32_1 = arith.constant 0 : i32
    return %c0_i32, %c0_i32_0 : i32, i32
  }
  func.func @transform_3(%arg0: i32, %arg1: i32) -> (i32, i32) {
    %c0_i32 = arith.constant 0 : i32
    %c0_i32_0 = arith.constant 0 : i32
    %c0_i32_1 = arith.constant 0 : i32
    return %c0_i32, %c0_i32_0 : i32, i32
  }
  func.func @transform_4(%arg0: i32, %arg1: i32) -> (i32, i32) {
    %c0_i32 = arith.constant 0 : i32
    %c0_i32_0 = arith.constant 0 : i32
    %c0_i32_1 = arith.constant 0 : i32
    return %c0_i32, %c0_i32_0 : i32, i32
  }
  func.func @transform_5(%arg0: i32, %arg1: i32) -> (i32, i32) {
    %c0_i32 = arith.constant 0 : i32
    %c0_i32_0 = arith.constant 0 : i32
    %c0_i32_1 = arith.constant 0 : i32
    return %c0_i32, %c0_i32_0 : i32, i32
  }
  func.func @transform_6(%arg0: i32, %arg1: i32) -> (i32, i32) {
    %c0_i32 = arith.constant 0 : i32
    %c0_i32_0 = arith.constant 0 : i32
    %c0_i32_1 = arith.constant 0 : i32
    return %c0_i32, %c0_i32_0 : i32, i32
  }
  func.func @transform_7(%arg0: i32, %arg1: i32) -> (i32, i32) {
    %c0_i32 = arith.constant 0 : i32
    %c0_i32_0 = arith.constant 0 : i32
    %c0_i32_1 = arith.constant 0 : i32
    return %c0_i32, %c0_i32_0 : i32, i32
  }
  func.func @transform_8(%arg0: i32, %arg1: i32) -> (i32, i32) {
    %c0_i32 = arith.constant 0 : i32
    %c0_i32_0 = arith.constant 0 : i32
    %c0_i32_1 = arith.constant 0 : i32
    return %c0_i32, %c0_i32_0 : i32, i32
  }
  func.func @transform_9(%arg0: i32, %arg1: i32) -> (i32, i32, i32) {
    %c0_i32 = arith.constant 0 : i32
    %c0_i32_0 = arith.constant 0 : i32
    return %arg0, %arg1, %c0_i32 : i32, i32, i32
  }
}

</mosaic_0001>

<bundles_post_ra>
// kernel: transformer_forward.8
= control target key start
LH: loop header
LB: loop body
LE: loop exit
PB: predicated region body
PF: predicated region fallthrough
CT: control target
= control target key end

     0   :  { %s775_s30 = smov 0   ;;  %s777_s10 = smov 0   ;;  %s866_s0 = inlined_call_operand.vmem [shape: f32[2,8,32], index: 0, kind: input, shape index: {}]   ;;  %s867_s1 = inlined_call_operand.vmem [shape: f32[1,32], index: 1, kind: input, shape index: {}]   ;;  %s868_s2 = inlined_call_operand.vmem [shape: f32[1,32], index: 2, kind: input, shape index: {}]   ;;  %s869_s3 = inlined_call_operand.vmem [shape: bf16[32,128], index: 3, kind: input, shape index: {}]   ;;  %s870_s4 = inlined_call_operand.vmem [shape: f32[1,128], index: 4, kind: input, shape index: {}]   ;;  %s871_s5 = inlined_call_operand.vmem [shape: bf16[128,32], index: 5, kind: input, shape index: {}]   ;;  %s872_s6 = inlined_call_operand.vmem [shape: f32[1,32], index: 6, kind: input, shape index: {}]   ;;  %s873_s7 = inlined_call_operand.vmem [shape: f32[1,32], index: 7, kind: input, shape index: {}]   ;;  %s874_s8 = inlined_call_operand.vmem [shape: f32[1,32], index: 8, kind: input, shape index: {}]   ;;  %s875_s9 = inlined_call_operand.vmem [shape: f32[2,8,32], index: 9, kind: output, shape index: {}]  }
   0x1   :  { %s779_s11 = smov 0  }
   0x2 LB: > { %s31_s7 = sadd.s32 1, %s718_s10  ;;  %p609_p0 = scmp.ge.s32.totalorder %s722_s11, 1  ;;  %s722_s11 = sphi %s779_s11, %s19_s11   ;;  %s718_s10 = sphi %s777_s10, %s877_s10   ;;  %s714_s30 = sphi %s775_s30, %s876_s30  }
   0x3   : > { %p33_p1 = scmp.ge.s32.totalorder %s31_s7, 2  ;;  %p305_p2 = scmp.lt.s32.totalorder %s722_s11, 3 }
   0x5   : > { %s879_s7 = smov (%p33_p1, %s31_s7), 0  ;;  %p306_p3 = pnand %p609_p0, %p305_p2 }
   0x6   : > { %p345_p4 = scmp.lt.s32.totalorder (!%p306_p3), %s714_s30, 1 }
   0x7   : > { %309 = sbr.rel (%p306_p3) target bundleno = 571 (0x23b), region = 56 }
   0xc   : > { %s881_s30 = smov (!%p345_p4, %s714_s30), 1  ;;  %vm363_vm0 = vcmask 261120   ;;  %v724_v2 = vmov 32.0   ;;  %v656_v14 = vld [vmem:[%s869_s3 + $0x8] sm:$0xff]  ;;  %v655_v15 = vld [vmem:[%s869_s3] sm:$0xff]  ;;  %v664_v16 = vld [vmem:[%s871_s5 + $0x38] sm:$0xff] }
   0xd   : > { %s610_s8 = sshll.u32 %s881_s30, 3  ;;  %694 = vrcp.f32 %v724_v2  ;;  %431 = vmatpush.bf16.msra.mxu0 %v656_v14  ;;  %516 = vmatpush.bf16.msra.mxu1 %v664_v16  ;;  %v663_v19 = vld [vmem:[%s871_s5 + $0x30] sm:$0xff]  ;;  %v690_v27 = vld [vmem:[%s867_s1] ss:$0 sm:$0xff]  ;;  %v662_v34 = vld [vmem:[%s871_s5 + $0x28] sm:$0xff] }
   0xe   : > { %s351_s14 = scalar_lea.vmem %s866_s0, %s610_s8  ;;  %v691_v30 = vld [vmem:[%s868_s2] ss:$0 sm:$0xff]  ;;  %v660_v36 = vld [vmem:[%s871_s5 + $0x18] sm:$0xff]  ;;  %v659_v37 = vld [vmem:[%s871_s5 + $0x10] sm:$0xff]  ;;  %s358_s27 = scalar_lea.vmem %s875_s9, %s610_s8 }
   0xf   : > { %v801_v0 = vld [vmem:[%s351_s14] sm:$0xff]  ;;  %v658_v38 = vld [vmem:[%s871_s5 + $0x8] sm:$0xff] }
  0x10   : > { %v364_v1 = vsel %vm363_vm0, %v801_v0, 0.0  ;;  %v661_v35 = vld [vmem:[%s871_s5 + $0x20] sm:$0xff] }
  0x11   : > { %365 = vadd.xlane.f32.xlu0 %v364_v1  ;;  %432 = vmatpush.bf16.msra.mxu0 %v655_v15  ;;  %v657_v39 = vld [vmem:[%s871_s5] sm:$0xff] }
  0x12   : > { %517 = vmatpush.bf16.msra.mxu1 %v663_v19  ;;  %v692_v40 = vld [vmem:[%s870_s4] ss:$0 sm:$0xff] }
  0x13   : > { %v695_v3 = vpop.eup %694  ;;  %v693_v54 = vld [vmem:[%s872_s6] ss:$0 sm:$0xff] }
  0x14   : > { %v368_v4 = vmul.f32 32.0, %v695_v3  ;;  %vm372_vm1 = vweird.f32 %v695_v3 }
  0x16   : > { %v369_v5 = vsub.f32 1.0, %v368_v4  ;;  %518 = vmatpush.bf16.msra.mxu1 %v662_v34 }
  0x18   : > { %v370_v6 = vmul.f32 %v695_v3, %v369_v5 }
  0x1a   : > { %v371_v7 = vadd.f32 %v695_v3, %v370_v6  ;;  %519 = vmatpush.bf16.msra.mxu1 %v661_v35 }
  0x1c   : > { %v373_v8 = vsel %vm372_vm1, %v695_v3, %v371_v7 }
  0x1e   : > { %520 = vmatpush.bf16.msra.mxu1 %v660_v36 }
  0x22   : > { %521 = vmatpush.bf16.msra.mxu1 %v659_v37 }
  0x26   : > { %522 = vmatpush.bf16.msra.mxu1 %v658_v38 }
  0x2a   : > { %523 = vmatpush.bf16.msra.mxu1 %v657_v39 }
  0x84   : > { %v366_v9 = vpop.xlane.xlu0 %365 }
  0x85   : > { %v374_v10 = vmul.f32 %v373_v8, %v366_v9 }
  0x87   : > { %v375_v11 = vsub.f32 %v801_v0, %v374_v10 }
  0x89   : > { %v376_v12 = vmul.f32 %v375_v11, %v375_v11 }
  0x8b   : > { %v377_v13 = vsel %vm363_vm0, %v376_v12, 0.0 }
  0x8c   : > { %378 = vadd.xlane.f32.xlu0 %v377_v13 }
  0xff   : > { %v379_v17 = vpop.xlane.xlu0 %378 }
 0x100   : > { %v380_v18 = vmul.f32 %v379_v17, %v373_v8 }
 0x102   : > { %v381_v20 = vadd.f32 1e-05, %v380_v18 }
 0x104   : > { %696 = vrsqrt.f32 %v381_v20  ;;  %vm388_vm3 = vweird.f32 %v381_v20 }
 0x10a   : > { %v697_v21 = vpop.eup %696 }
 0x10b   : > { %v383_v22 = vmul.f32 %v697_v21, %v381_v20  ;;  %vm389_vm2 = vweird.f32 %v697_v21 }
 0x10c   : > { %vm390_vm4 = vmor %vm388_vm3, %vm389_vm2 }
 0x10d   : > { %v384_v23 = vmul.f32 %v697_v21, %v383_v22 }
 0x10f   : > { %v385_v24 = vmul.f32 0.5, %v384_v23 }
 0x111   : > { %v386_v25 = vsub.f32 1.5, %v385_v24 }
 0x113   : > { %v387_v26 = vmul.f32 %v697_v21, %v386_v25 }
 0x115   : > { %v391_v28 = vsel %vm390_vm4, %v697_v21, %v387_v26 }
 0x116   : > { %v392_v29 = vmul.f32 %v391_v28, %v375_v11 }
 0x118   : > { %v396_v31 = vmul.f32 %v690_v27, %v392_v29 }
 0x11a   : > { %v400_v32 = vadd.f32 %v691_v30, %v396_v31 }
 0x11c   : > { %v401_v33 = vpack.c.bf16 %v400_v32, %v400_v32 }
 0x11e   : > { %620 = vmatmul.msk.bf16.vlgmr.msra.gmra.mxu0 %vm363_vm0, %v401_v33 }
 0x19b   : > { %v434_v41 = vpop.f32.mrf.mxu0 }
 0x19c   : > { %v435_v42 = vadd.f32 %v692_v40, %v434_v41 }
 0x19e   : > { %v439_v43 = vmul.f32 0.044715, %v435_v42  ;;  %v438_v50 = vmul.f32 0.5, %v435_v42 }
 0x1a0   : > { %v440_v44 = vmul.f32 %v439_v43, %v435_v42 }
 0x1a2   : > { %v441_v45 = vmul.f32 %v440_v44, %v435_v42 }
 0x1a3   : > { %v436_v46 = vpop.f32.mrf.mxu0 }
 0x1a4   : > { %v442_v47 = vadd.f32 %v441_v45, %v435_v42 }
 0x1a6   : > { %v443_v48 = vmul.f32 0.7978846, %v442_v47 }
 0x1a8   : > { %698 = vtanh.f32 %v443_v48 }
 0x1ae   : > { %v699_v49 = vpop.eup %698 }
 0x1af   : > { %v445_v51 = vadd.f32 1.0, %v699_v49 }
 0x1b1   : > { %v446_v52 = vmul.f32 %v445_v51, %v438_v50 }
 0x1b3   : > { %v447_v53 = vpack.c.bf16 %v446_v52, %v446_v52 }
 0x1b5   : > { %524 = vmatmul.bf16.vlgmr.msra.gmra.mxu1 %v447_v53 }
 0x232   : > { %v525_v55 = vpop.f32.mrf.mxu1 }
 0x233   : > { %v526_v56 = vadd.f32 %v693_v54, %v525_v55 }
 0x235   : > { %v529_v57 = vadd.f32 %v526_v56, %v801_v0 }
 0x237   : > { %530 = vst.msk [vmem:[%s358_s27] sm:$0xff] %vm363_vm0, %v529_v57 }
 0x23a   : > { %v527_v58 = vpop.f32.mrf.mxu1 }
 0x23b PF: > { %s19_s11 = sadd.s32 1, %s722_s11   ;;  %s876_s30 = smov %s718_s10 }
 0x23c   : > { %p16_p5 = scmp.ge.s32.totalorder %s19_s11, 4   ;;  %s877_s10 = smov %s879_s7 }
 0x23e   :  { %18 = sbr.rel (!%p16_p5) target bundleno = 2 (0x2), region = 86 }

// kernel: transformer_forward.11
= control target key start
LH: loop header
LB: loop body
LE: loop exit
PB: predicated region body
PF: predicated region fallthrough
CT: control target
= control target key end

     0   :  { %s1070_s0 = inlined_call_operand.vmem [shape: f32[2,8,32], index: 0, kind: input, shape index: {}]   ;;  %s1071_s1 = inlined_call_operand.vmem [shape: f32[1,32], index: 1, kind: input, shape index: {}]   ;;  %s1072_s2 = inlined_call_operand.vmem [shape: f32[1,32], index: 2, kind: input, shape index: {}]   ;;  %s1073_s3 = inlined_call_operand.vmem [shape: bf16[32,128], index: 3, kind: input, shape index: {}]   ;;  %s1074_s4 = inlined_call_operand.vmem [shape: f32[1,128], index: 4, kind: input, shape index: {}]   ;;  %s1075_s5 = inlined_call_operand.vmem [shape: bf16[128,32], index: 5, kind: input, shape index: {}]   ;;  %s1076_s6 = inlined_call_operand.vmem [shape: f32[1,32], index: 6, kind: input, shape index: {}]   ;;  %s1077_s7 = inlined_call_operand.vmem [shape: f32[1,32], index: 7, kind: input, shape index: {}]   ;;  %s1078_s8 = inlined_call_operand.vmem [shape: f32[1,32], index: 8, kind: input, shape index: {}]   ;;  %s1079_s9 = inlined_call_operand.hbm [shape: f32[2,8,32], index: 9, kind: output, shape index: {}]  }
   0x1   :  { %1080 = sst [smem:[#allocation5_spill]] %s1070_s0 }
   0x2   :  { %14 = vsyncpa [#allocation3], 0 }
   0x3   :  { %16 = vsyncpa [#allocation3 + $0x1], 0  ;;  %s908_s30 = smov 0   ;;  %s910_s10 = smov 0  }
   0x4   :  { %s912_s11 = smov 0   ;;  %s914_s12 = smov 0  }
   0x5   :  { %s916_s13 = smov 0   ;;  %s918_s14 = smov 0  }
   0x6 LB: > { %s645_s15 = sadd.s32 4294967295, %s855_s14   ;;  %s646_s16 = sadd.s32 4294967294, %s855_s14   ;;  %s855_s14 = sphi %s918_s14, %s22_s14   ;;  %s851_s13 = sphi %s916_s13, %s1088_s13   ;;  %s847_s12 = sphi %s914_s12, %s1087_s12   ;;  %s843_s11 = sphi %s912_s11, %s1086_s11   ;;  %s839_s10 = sphi %s910_s10, %s1085_s10   ;;  %s835_s30 = sphi %s908_s30, %s1084_s30  }
   0x7   : > { %s34_s17 = sadd.s32 1, %s851_s13  ;;  %s239_s18 = sadd.s32 1, %s843_s11 }
   0x8   : > { %p36_p0 = scmp.ge.s32.totalorder %s34_s17, 2  ;;  %p249_p1 = scmp.ne.s32.totalorder %s843_s11, %s839_s10 }
   0x9   : > { %p250_p2 = scmp.eq.s32.totalorder %s645_s15, 1  ;;  %p255_p3 = scmp.ne.s32.totalorder %s839_s10, %s835_s30 }
   0xa   : > { %s1090_s17 = smov (%p36_p0, %s34_s17), 0  ;;  %p256_p5 = scmp.eq.s32.totalorder %s646_s16, 1 }
   0xb   : > { %p948_p4 = por %p250_p2, %p249_p1  ;;  %s234_s20 = ssub.s32 %s851_s13, %s1090_s17 }
   0xc   : > { %p649_p6 = scmp.ge.s32.totalorder %s855_s14, 1  ;;  %p237_p7 = scmp.eq.s32.totalorder %s234_s20, 0 }
   0xd   : > { %p955_p8 = por %p256_p5, %p255_p3  ;;  %p308_p9 = scmp.lt.s32.totalorder %s855_s14, 3 }
   0xe   : > { %s961_s22 = scalar_select %p237_p7, %s843_s11, %s239_s18  }
   0xf   : > { %p309_p10 = pnand %p649_p6, %p308_p9 }
  0x10   : > { %p346_p11 = scmp.lt.s32.totalorder (!%p309_p10), %s847_s12, 1  ;;  %s1083_s0 = sld [smem:[#allocation5_spill]] (!%p309_p10) }
  0x11   : > { %312 = sbr.rel (%p309_p10) target bundleno = 849 (0x351), region = 56  ;;  %s694_s25 = sshll.u32 (!%p309_p10), %s847_s12, 3 }
  0x12   : > { %s569_s15 = scalar_lea.hbm (!%p309_p10), %s1079_s9, %s694_s25 }
  0x16   : > { %s347_s23 = scalar_select %p346_p11, %s847_s12, 1  ;;  %vm357_vm0 = vcmask 261120   ;;  %v857_v2 = vmov 32.0   ;;  %v698_v14 = vld [vmem:[%s1073_s3 + $0x8] sm:$0xff]  ;;  %v697_v15 = vld [vmem:[%s1073_s3] sm:$0xff]  ;;  %v706_v16 = vld [vmem:[%s1075_s5 + $0x38] sm:$0xff] }
  0x17   : > { %769 = vrcp.f32 %v857_v2  ;;  %425 = vmatpush.bf16.msra.mxu0 %v698_v14  ;;  %510 = vmatpush.bf16.msra.mxu1 %v706_v16  ;;  %v705_v19 = vld [vmem:[%s1075_s5 + $0x30] sm:$0xff]  ;;  %v763_v27 = vld [vmem:[%s1071_s1] ss:$0 sm:$0xff]  ;;  %v704_v34 = vld [vmem:[%s1075_s5 + $0x28] sm:$0xff] }
  0x18   : > { %s651_s24 = sshll.u32 %s347_s23, 3  ;;  %v764_v30 = vld [vmem:[%s1072_s2] ss:$0 sm:$0xff]  ;;  %v702_v36 = vld [vmem:[%s1075_s5 + $0x18] sm:$0xff]  ;;  %v701_v37 = vld [vmem:[%s1075_s5 + $0x10] sm:$0xff]  ;;  %s343_s23 = sand.u32 1, %s839_s10  }
  0x19   : > { %s352_s27 = scalar_lea.vmem %s1083_s0, %s651_s24  ;;  %v703_v35 = vld [vmem:[%s1075_s5 + $0x20] sm:$0xff]  ;;  %v700_v38 = vld [vmem:[%s1075_s5 + $0x8] sm:$0xff]  ;;  %s650_s24 = sshll.u32 %s343_s23, 3 }
  0x1a   : > { %v968_v0 = vld [vmem:[%s352_s27] sm:$0xff]  ;;  %s345_s20 = scalar_lea.vmem [#allocation2], %s650_s24  ;;  %s573_s0 = sshll.u32 %s569_s15, 4  ;;  %s574_s0 = int_to_ptr.hbm [resolvable:$true] %s573_s0 }
  0x1b   : > { %v358_v1 = vsel %vm357_vm0, %v968_v0, 0.0  ;;  %426 = vmatpush.bf16.msra.mxu0 %v697_v15  ;;  %511 = vmatpush.bf16.msra.mxu1 %v705_v19  ;;  %v699_v39 = vld [vmem:[%s1075_s5] sm:$0xff]  ;;  %s571_s12 = sshll.u32 %s345_s20, 4  ;;  %s558_s26 = scalar_lea.sflag [#allocation3], %s343_s23  ;;  %s572_s12 = int_to_ptr.vmem [resolvable:$true] %s571_s12 }
  0x1c   : > { %359 = vadd.xlane.f32.xlu0 %v358_v1  ;;  %v765_v40 = vld [vmem:[%s1074_s4] ss:$0 sm:$0xff]  ;;  %s791_s27 = sshra.s32 %s574_s0, 4  ;;  %s797_s24 = scalar_lea.hbm %s1079_s9, 16  ;;  %s792_s27 = int_to_ptr.hbm [resolvable:$true] %s791_s27 }
  0x1d   : > { %v770_v3 = vpop.eup %769  ;;  %v766_v54 = vld [vmem:[%s1076_s6] ss:$0 sm:$0xff]  ;;  %s793_s25 = scalar_lea.hbm %s792_s27, 8  ;;  %p798_p1 = scmp.lt.s32.totalorder %s792_s27, %s1079_s9 }
  0x1e   : > { %v362_v4 = vmul.f32 32.0, %v770_v3  ;;  %vm366_vm1 = vweird.f32 %v770_v3  ;;  %p794_p12 = scmp.ne.s32.totalorder %s792_s27, %s793_s25  ;;  %p799_p2 = scmp.lt.s32.totalorder %s797_s24, %s793_s25 }
  0x1f   : > { %512 = vmatpush.bf16.msra.mxu1 %v704_v34 }
  0x20   : > { %v363_v5 = vsub.f32 1.0, %v362_v4  ;;  %p795_p13 = pnand %p794_p12, %p948_p4  ;;  %p800_p3 = por %p799_p2, %p798_p1 }
  0x22   : > { %v364_v6 = vmul.f32 %v770_v3, %v363_v5  ;;  %p796_p0 = pneg %p795_p13 }
  0x23   : > { %513 = vmatpush.bf16.msra.mxu1 %v703_v35 }
  0x24   : > { %v365_v7 = vadd.f32 %v770_v3, %v364_v6  ;;  %p801_p5 = pnand %p800_p3, %p796_p0 }
  0x26   : > { %v972_v8 = vsel %vm366_vm1, %v770_v3, %v365_v7 }
  0x27   : > { %514 = vmatpush.bf16.msra.mxu1 %v702_v36 }
  0x2b   : > { %515 = vmatpush.bf16.msra.mxu1 %v701_v37 }
  0x2f   : > { %516 = vmatpush.bf16.msra.mxu1 %v700_v38 }
  0x33   : > { %517 = vmatpush.bf16.msra.mxu1 %v699_v39 }
  0x8f   : > { %v360_v9 = vpop.xlane.xlu0 %359 }
  0x90   : > { %v368_v10 = vmul.f32 %v972_v8, %v360_v9 }
  0x92   : > { %v369_v11 = vsub.f32 %v968_v0, %v368_v10 }
  0x94   : > { %v370_v12 = vmul.f32 %v369_v11, %v369_v11 }
  0x96   : > { %v371_v13 = vsel %vm357_vm0, %v370_v12, 0.0 }
  0x97   : > { %372 = vadd.xlane.f32.xlu0 %v371_v13  ;;  %v768_v13 = vld [vmem:[%s1078_s8] ss:$0 sm:$0xff] }
 0x10a   : > { %v373_v17 = vpop.xlane.xlu0 %372 }
 0x10b   : > { %v374_v18 = vmul.f32 %v373_v17, %v972_v8 }
 0x10d   : > { %v375_v20 = vadd.f32 1e-05, %v374_v18 }
 0x10f   : > { %771 = vrsqrt.f32 %v375_v20  ;;  %vm382_vm3 = vweird.f32 %v375_v20 }
 0x115   : > { %v772_v21 = vpop.eup %771 }
 0x116   : > { %v377_v22 = vmul.f32 %v772_v21, %v375_v20  ;;  %vm383_vm2 = vweird.f32 %v772_v21 }
 0x117   : > { %vm384_vm4 = vmor %vm382_vm3, %vm383_vm2 }
 0x118   : > { %v378_v23 = vmul.f32 %v772_v21, %v377_v22 }
 0x11a   : > { %v379_v24 = vmul.f32 0.5, %v378_v23 }
 0x11c   : > { %v380_v25 = vsub.f32 1.5, %v379_v24 }
 0x11e   : > { %v381_v26 = vmul.f32 %v772_v21, %v380_v25 }
 0x120   : > { %v385_v28 = vsel %vm384_vm4, %v772_v21, %v381_v26 }
 0x121   : > { %v386_v29 = vmul.f32 %v385_v28, %v369_v11  ;;  %v767_v11 = vld [vmem:[%s1077_s7] ss:$0 sm:$0xff] }
 0x123   : > { %v390_v31 = vmul.f32 %v763_v27, %v386_v29 }
 0x125   : > { %v394_v32 = vadd.f32 %v764_v30, %v390_v31 }
 0x127   : > { %v395_v33 = vpack.c.bf16 %v394_v32, %v394_v32 }
 0x129   : > { %660 = vmatmul.msk.bf16.vlgmr.msra.gmra.mxu0 %vm357_vm0, %v395_v33 }
 0x1a6   : > { %v428_v41 = vpop.f32.mrf.mxu0 }
 0x1a7   : > { %v429_v42 = vadd.f32 %v765_v40, %v428_v41 }
 0x1a9   : > { %v433_v43 = vmul.f32 0.044715, %v429_v42  ;;  %v432_v50 = vmul.f32 0.5, %v429_v42 }
 0x1ab   : > { %v434_v44 = vmul.f32 %v433_v43, %v429_v42 }
 0x1ad   : > { %v435_v45 = vmul.f32 %v434_v44, %v429_v42 }
 0x1ae   : > { %v430_v46 = vpop.f32.mrf.mxu0 }
 0x1af   : > { %v436_v47 = vadd.f32 %v435_v45, %v429_v42 }
 0x1b1   : > { %v437_v48 = vmul.f32 0.7978846, %v436_v47 }
 0x1b3   : > { %773 = vtanh.f32 %v437_v48 }
 0x1b9   : > { %v774_v49 = vpop.eup %773 }
 0x1ba   : > { %v439_v51 = vadd.f32 1.0, %v774_v49 }
 0x1bc   : > { %v440_v52 = vmul.f32 %v439_v51, %v432_v50 }
 0x1be   : > { %v441_v53 = vpack.c.bf16 %v440_v52, %v440_v52 }
 0x1c0   : > { %518 = vmatmul.bf16.vlgmr.msra.gmra.mxu1 %v441_v53 }
 0x23d   : > { %v519_v55 = vpop.f32.mrf.mxu1 }
 0x23e   : > { %v520_v56 = vadd.f32 %v766_v54, %v519_v55 }
 0x240   : > { %v523_v57 = vadd.f32 %v520_v56, %v968_v0 }
 0x242   : > { %v526_v58 = vsel %vm357_vm0, %v523_v57, 0.0 }
 0x243   : > { %527 = vadd.xlane.f32.xlu1 %v526_v58 }
 0x245   : > { %v521_v59 = vpop.f32.mrf.mxu1 }
 0x2b6   : > { %v528_v60 = vpop.xlane.xlu1 %527 }
 0x2b7   : > { %v529_v61 = vmul.f32 %v528_v60, %v972_v8 }
 0x2b9   : > { %v530_v62 = vsub.f32 %v523_v57, %v529_v61 }
 0x2bb   : > { %v531_v63 = vmul.f32 %v530_v62, %v530_v62 }
 0x2bd   : > { %v532_v1 = vsel %vm357_vm0, %v531_v63, 0.0 }
 0x2be   : > { %533 = vadd.xlane.f32.xlu1 %v532_v1 }
 0x331   : > { %v534_v2 = vpop.xlane.xlu1 %533 }
 0x332   : > { %v535_v3 = vmul.f32 %v534_v2, %v972_v8 }
 0x334   : > { %v536_v4 = vadd.f32 1e-05, %v535_v3 }
 0x336   : > { %775 = vrsqrt.f32 %v536_v4  ;;  %vm543_vm6 = vweird.f32 %v536_v4 }
 0x33c   : > { %v776_v0 = vpop.eup %775 }
 0x33d   : > { %v538_v5 = vmul.f32 %v776_v0, %v536_v4  ;;  %vm544_vm5 = vweird.f32 %v776_v0 }
 0x33e   : > { %vm545_vm7 = vmor %vm543_vm6, %vm544_vm5 }
 0x33f   : > { %v539_v6 = vmul.f32 %v776_v0, %v538_v5 }
 0x341   : > { %v540_v7 = vmul.f32 0.5, %v539_v6 }
 0x343   : > { %v541_v9 = vsub.f32 1.5, %v540_v7 }
 0x345   : > { %v542_v10 = vmul.f32 %v776_v0, %v541_v9 }
 0x347   : > { %v546_v8 = vsel %vm545_vm7, %v776_v0, %v542_v10 }
 0x348   : > { %v547_v12 = vmul.f32 %v546_v8, %v530_v62 }
 0x34a   : > { %v551_v14 = vmul.f32 %v767_v11, %v547_v12 }
 0x34c   : > { %v555_v15 = vadd.f32 %v768_v13, %v551_v14 }
 0x34e   : > { %556 = vst.msk [vmem:[%s345_s20] sm:$0xff] %vm357_vm0, %v555_v15 }
 0x34f   : > { %804 = shalt.err (!%p801_p5)
}
 0x350   : > { %707 = dma.vmem_to_hbm [thread:$0]  (%p948_p4), %s572_s12, 128, %s574_s0, %s558_s26  }
 0x351 PF: > { %p713_p6 = scmp.ge.s32.totalorder %s855_s14, 2  ;;  %s585_s23 = sand.u32 1, %s835_s30  }
 0x352   : > { %s586_s18 = scalar_lea.sflag [#allocation3], %s585_s23 }
 0x353   : > { %p710_p7 = pnand %p713_p6, %p955_p8 }
 0x355   : > { %p711_p9 = pneg %p710_p7 }
 0x357   : > { %830 = dma.done.wait (%p711_p9), %s586_s18, 128  }
 0x358   : > { %832 = vsyncadd (%p711_p9), %s586_s18, 4294967168  ;;  %s22_s14 = sadd.s32 1, %s855_s14   ;;  %s1084_s30 = smov %s839_s10 }
 0x359   : > { %p19_p10 = scmp.ge.s32.totalorder %s22_s14, 4   ;;  %s1085_s10 = smov %s843_s11 }
 0x35a   : > { %s1086_s11 = smov %s961_s22  ;;  %s1087_s12 = smov %s851_s13 }
 0x35b   : > { %s1088_s13 = smov %s1090_s17  ;;  %21 = sbr.rel (!%p19_p10) target bundleno = 6 (0x6), region = 91 }
 0x360   :  { %592 = vsyncpa [#allocation3], 1 }
 0x361   :  { %594 = vsyncpa [#allocation3 + $0x1], 1 }

// kernel: transformer_forward.6
= control target key start
LH: loop header
LB: loop body
LE: loop exit
PB: predicated region body
PF: predicated region fallthrough
CT: control target
= control target key end

     0   :  { %s1150_s24 = smov 0   ;;  %s1152_s25 = smov 0   ;;  %s1352_s0 = inlined_call_operand.vmem [shape: f32[2,8,32], index: 0, kind: input, shape index: {}]   ;;  %s1353_s1 = inlined_call_operand.vmem [shape: f32[1,32], index: 1, kind: input, shape index: {}]   ;;  %s1354_s2 = inlined_call_operand.vmem [shape: f32[1,32], index: 2, kind: input, shape index: {}]   ;;  %s1355_s3 = inlined_call_operand.vmem [shape: bf16[32,96], index: 3, kind: input, shape index: {}]   ;;  %s1356_s4 = inlined_call_operand.vmem [shape: f32[1,96], index: 4, kind: input, shape index: {}]   ;;  %s1357_s5 = inlined_call_operand.vmem [shape: bf16[2,4,8,8], index: 5, kind: output, shape index: {0}]   ;;  %s1358_s6 = inlined_call_operand.vmem [shape: bf16[2,4,8,8], index: 6, kind: output, shape index: {1}]   ;;  %s1359_s7 = inlined_call_operand.vmem [shape: bf16[2,4,8,8], index: 7, kind: output, shape index: {2}]  }
   0x1   :  { %s1154_s26 = smov 0  }
   0x2 LB: > { %s30_s27 = sadd.s32 1, %s1096_s25  ;;  %p995_p0 = scmp.ge.s32.totalorder %s1100_s26, 1  ;;  %s1100_s26 = sphi %s1154_s26, %s18_s26   ;;  %s1096_s25 = sphi %s1152_s25, %s1361_s25   ;;  %s1092_s24 = sphi %s1150_s24, %s1360_s24  }
   0x3   : > { %p32_p1 = scmp.ge.s32.totalorder %s30_s27, 2  ;;  %p264_p2 = scmp.lt.s32.totalorder %s1100_s26, 3 }
   0x5   : > { %s1363_s27 = smov (%p32_p1, %s30_s27), 0  ;;  %p265_p3 = pnand %p995_p0, %p264_p2 }
   0x6   : > { %p317_p4 = scmp.lt.s32.totalorder (!%p265_p3), %s1092_s24, 1  ;;  %s1103_s19 = smov (!%p265_p3), 104  }
   0x7   : > { %268 = sbr.rel (%p265_p3) target bundleno = 691 (0x2b3), region = 40  ;;  %s1104_s20 = smov (!%p265_p3), 112  }
   0x8   : > { %s1105_s21 = smov (!%p265_p3), 120   ;;  %s1107_s22 = smov (!%p265_p3), 64  }
   0x9   : > { %s1108_s23 = smov (!%p265_p3), 96  }
   0xc   : > { %s1365_s24 = smov (!%p317_p4, %s1092_s24), 1  ;;  %vm352_vm0 = vcmask 261120   ;;  %v1102_v2 = vmov 32.0   ;;  %v1018_v14 = vld [vmem:[%s1355_s3 + $0x8] sm:$0xff]  ;;  %v1017_v15 = vld [vmem:[%s1355_s3] sm:$0xff]  ;;  %vm438_vm5 = vcmask 1047556  }
   0xd   : > { %s996_s28 = sshll.u32 %s1365_s24, 3  ;;  %1074 = vrcp.f32 %v1102_v2  ;;  %420 = vmatpush.bf16.msra.mxu0 %v1018_v14  ;;  %v1071_v25 = vld [vmem:[%s1353_s1] ss:$0 sm:$0xff]  ;;  %v1106_v36 = vmov 1983009808   ;;  %vm552_vm6 = vcmask 60416  }
   0xe   : > { %s323_s8 = scalar_lea.vmem %s1352_s0, %s996_s28  ;;  %v1072_v28 = vld [vmem:[%s1354_s2] ss:$0 sm:$0xff]  ;;  %v443_v37 = vunpack.c.l.s4 %v1106_v36  ;;  %v1109_v45 = vmov 1934713408   ;;  %s1227_s28 = sshll.u32 %s1365_s24, 4 }
   0xf   : > { %v349_v0 = vld [vmem:[%s323_s8] sm:$0xff]  ;;  %v467_v46 = vunpack.c.l.s4 %v1109_v45  ;;  %s331_s8 = scalar_lea.vmem %s1357_s5, %s1227_s28  ;;  %s347_s10 = scalar_lea.vmem %s1359_s7, %s1227_s28 }
  0x10   : > { %v353_v1 = vsel %vm352_vm0, %v349_v0, 0.0  ;;  %v1073_v32 = vld [vmem:[%s1356_s4] ss:$0 sm:$0xff]  ;;  %v1193_v44 = vunpack.c.0.s8 %v443_v37  ;;  %s339_s13 = scalar_lea.vmem %s1358_s6, %s1227_s28 }
  0x11   : > { %354 = vadd.xlane.f32.xlu0 %v353_v1  ;;  %421 = vmatpush.bf16.msra.mxu0 %v1017_v15  ;;  %v1198_v51 = vunpack.c.0.s8 %v467_v46 }
  0x13   : > { %v1075_v3 = vpop.eup %1074 }
  0x14   : > { %v357_v4 = vmul.f32 32.0, %v1075_v3  ;;  %vm361_vm1 = vweird.f32 %v1075_v3 }
  0x16   : > { %v358_v5 = vsub.f32 1.0, %v357_v4 }
  0x18   : > { %v359_v6 = vmul.f32 %v1075_v3, %v358_v5 }
  0x1a   : > { %v360_v7 = vadd.f32 %v1075_v3, %v359_v6 }
  0x1c   : > { %v362_v8 = vsel %vm361_vm1, %v1075_v3, %v360_v7 }
  0x84   : > { %v355_v9 = vpop.xlane.xlu0 %354 }
  0x85   : > { %v363_v10 = vmul.f32 %v362_v8, %v355_v9 }
  0x87   : > { %v364_v11 = vsub.f32 %v349_v0, %v363_v10 }
  0x89   : > { %v365_v12 = vmul.f32 %v364_v11, %v364_v11 }
  0x8b   : > { %v366_v13 = vsel %vm352_vm0, %v365_v12, 0.0 }
  0x8c   : > { %367 = vadd.xlane.f32.xlu0 %v366_v13 }
  0xff   : > { %v368_v16 = vpop.xlane.xlu0 %367 }
 0x100   : > { %v369_v17 = vmul.f32 %v368_v16, %v362_v8 }
 0x102   : > { %v370_v18 = vadd.f32 1e-05, %v369_v17 }
 0x104   : > { %1076 = vrsqrt.f32 %v370_v18  ;;  %vm377_vm3 = vweird.f32 %v370_v18 }
 0x10a   : > { %v1077_v19 = vpop.eup %1076 }
 0x10b   : > { %v372_v20 = vmul.f32 %v1077_v19, %v370_v18  ;;  %vm378_vm2 = vweird.f32 %v1077_v19 }
 0x10c   : > { %vm379_vm4 = vmor %vm377_vm3, %vm378_vm2 }
 0x10d   : > { %v373_v21 = vmul.f32 %v1077_v19, %v372_v20 }
 0x10f   : > { %v374_v22 = vmul.f32 0.5, %v373_v21 }
 0x111   : > { %v375_v23 = vsub.f32 1.5, %v374_v22 }
 0x113   : > { %v376_v24 = vmul.f32 %v1077_v19, %v375_v23 }
 0x115   : > { %v380_v26 = vsel %vm379_vm4, %v1077_v19, %v376_v24 }
 0x116   : > { %v381_v27 = vmul.f32 %v380_v26, %v364_v11 }
 0x118   : > { %v385_v29 = vmul.f32 %v1071_v25, %v381_v27 }
 0x11a   : > { %v389_v30 = vadd.f32 %v1072_v28, %v385_v29 }
 0x11c   : > { %v390_v31 = vpack.c.bf16 %v389_v30, %v389_v30 }
 0x11e   : > { %1011 = vmatmul.msk.bf16.vlgmr.msra.gmra.mxu0 %vm352_vm0, %v390_v31 }
 0x19b   : > { %v423_v33 = vpop.f32.mrf.mxu0 }
 0x19c   : > { %v424_v34 = vadd.f32 %v1073_v32, %v423_v33 }
 0x19e   : > { %434 = vrot.lane.b32.xlu2 %v424_v34, %s1103_s19  ;;  %431 = vrot.lane.b32.xlu1 %v424_v34, %s1104_s20  ;;  %v440_v42 = vrot.slane %v424_v34, 4 }
 0x1a3   : > { %v425_v35 = vpop.f32.mrf.mxu0 }
 0x1a6   : > { %428 = vrot.lane.b32.xlu1 %v424_v34, %s1105_s21 }
 0x1f8   : > { %v435_v43 = vpop.permute.xlu2 %434 }
 0x1f9   : > { %v450_v49 = vrot.slane %v435_v43, 4 }
 0x210   : > { %v432_v38 = vpop.permute.xlu1 %431 }
 0x211   : > { %v437_v39 = vrot.slane %v432_v38, 4  ;;  %v1056_v40 = vpack.i.bf16 %v432_v38, %v424_v34  ;;  %v441_v47 = vsel %vm438_vm5, %v432_v38, %v440_v42 }
 0x212   : > { %v449_v50 = vperm.slane %v441_v47, %v1193_v44 }
 0x213   : > { %v439_v41 = vsel %vm438_vm5, %v437_v39, %v424_v34  ;;  %1057 = vrot.lane.b32.xlu0 %v1056_v40, %s1107_s22  ;;  %1052 = vrot.lane.b32.xlu2 %v1056_v40, %s1108_s23 }
 0x214   : > { %v445_v48 = vperm.slane %v439_v41, %v1193_v44  ;;  %v476_v59 = vrot.slane %v449_v50, 4 }
 0x216   : > { %v464_v56 = vrot.slane %v445_v48, 4 }
 0x218   : > { %v429_v52 = vpop.permute.xlu1 %428 }
 0x219   : > { %v451_v53 = vsel %vm438_vm5, %v450_v49, %v429_v52  ;;  %v452_v54 = vrot.slane %v429_v52, 4  ;;  %v1066_v55 = vpack.i.bf16 %v435_v43, %v429_v52 }
 0x21a   : > { %v457_v57 = vperm.slane %v451_v53, %v1193_v44 }
 0x21b   : > { %v453_v58 = vsel %vm438_vm5, %v435_v43, %v452_v54  ;;  %1067 = vrot.lane.b32.xlu2 %v1066_v55, %s1107_s22  ;;  %1062 = vrot.lane.b32.xlu1 %v1066_v55, %s1108_s23 }
 0x21c   : > { %v461_v60 = vperm.slane %v453_v58, %v1193_v44  ;;  %v462_v61 = vrot.slane %v457_v57, 4  ;;  %v465_v62 = vsel %vm438_vm5, %v457_v57, %v464_v56 }
 0x21d   : > { %v473_v63 = vperm.slane %v465_v62, %v1198_v51 }
 0x21e   : > { %v463_v0 = vsel %vm438_vm5, %v462_v61, %v445_v48  ;;  %v474_v1 = vrot.slane %v461_v60, 4  ;;  %v477_v2 = vsel %vm438_vm5, %v461_v60, %v476_v59 }
 0x21f   : > { %v469_v3 = vperm.slane %v463_v0, %v1198_v51  ;;  %v485_v4 = vperm.slane %v477_v2, %v1198_v51  ;;  %v488_v5 = vrot.slane %v473_v63, 4 }
 0x220   : > { %v475_v6 = vsel %vm438_vm5, %v474_v1, %v449_v50 }
 0x221   : > { %v481_v7 = vperm.slane %v475_v6, %v1198_v51  ;;  %v486_v8 = vrot.slane %v469_v3, 4  ;;  %v489_v9 = vsel %vm438_vm5, 0.0, %v488_v5  ;;  %v492_v10 = vrot.slane %v485_v4, 4 }
 0x222   : > { %v494_v11 = vsel %vm438_vm5, %v488_v5, %v469_v3  ;;  %v499_v12 = vrot.slane %v489_v9, 4 }
 0x223   : > { %v487_v13 = vsel %vm438_vm5, 0.0, %v486_v8  ;;  %v490_v14 = vrot.slane %v481_v7, 4  ;;  %v493_v15 = vsel %vm438_vm5, 0.0, %v492_v10  ;;  %v498_v16 = vperm.slane %v494_v11, %v1193_v44 }
 0x224   : > { %v500_v17 = vsel %vm438_vm5, %v499_v12, %v487_v13  ;;  %v505_v18 = vsel %vm438_vm5, %v492_v10, %v481_v7  ;;  %v510_v19 = vrot.slane %v493_v15, 4 }
 0x225   : > { %v491_v20 = vsel %vm438_vm5, 0.0, %v490_v14  ;;  %v504_v21 = vperm.slane %v500_v17, %v1193_v44  ;;  %v509_v22 = vperm.slane %v505_v18, %v1193_v44  ;;  %v518_v23 = vrot.slane %v498_v16, 4 }
 0x226   : > { %v511_v24 = vsel %vm438_vm5, %v510_v19, %v491_v20 }
 0x227   : > { %v515_v25 = vperm.slane %v511_v24, %v1193_v44  ;;  %v516_v26 = vrot.slane %v504_v21, 4  ;;  %v519_v27 = vsel %vm438_vm5, %v504_v21, %v518_v23  ;;  %v530_v28 = vrot.slane %v509_v22, 4 }
 0x228   : > { %v527_v29 = vperm.slane %v519_v27, %v1198_v51 }
 0x229   : > { %v517_v30 = vsel %vm438_vm5, %v516_v26, %v498_v16  ;;  %v528_v31 = vrot.slane %v515_v25, 4  ;;  %v531_v32 = vsel %vm438_vm5, %v515_v25, %v530_v28 }
 0x22a   : > { %v523_v33 = vperm.slane %v517_v30, %v1198_v51  ;;  %v539_v34 = vperm.slane %v531_v32, %v1198_v51  ;;  %v546_v35 = vrot.slane %v527_v29, 4 }
 0x22b   : > { %v529_v36 = vsel %vm438_vm5, %v528_v31, %v509_v22 }
 0x22c   : > { %v535_v37 = vperm.slane %v529_v36, %v1198_v51  ;;  %v542_v38 = vrot.slane %v523_v33, 4  ;;  %v544_v39 = vrot.slane %v539_v34, 4  ;;  %v547_v40 = vsel %vm438_vm5, %v539_v34, %v546_v35 }
 0x22d   : > { %v551_v41 = vpack.c.bf16 %v547_v40, %v547_v40 }
 0x22e   : > { %v540_v42 = vrot.slane %v535_v37, 4  ;;  %v543_v43 = vsel %vm438_vm5, %v535_v37, %v542_v38  ;;  %v545_v45 = vsel %vm438_vm5, %v544_v39, %v527_v29 }
 0x22f   : > { %v549_v46 = vpack.c.bf16 %v543_v43, %v543_v43  ;;  %v550_v47 = vpack.c.bf16 %v545_v45, %v545_v45  ;;  %556 = vst.msk [vmem:[%s331_s8 + $0xc] sm:$0xf] %vm552_vm6, %v551_v41 }
 0x230   : > { %v541_v48 = vsel %vm438_vm5, %v540_v42, %v523_v33 }
 0x231   : > { %v548_v49 = vpack.c.bf16 %v541_v48, %v541_v48  ;;  %554 = vst.msk [vmem:[%s331_s8 + $0x4] sm:$0xf] %vm552_vm6, %v549_v46 }
 0x232   : > { %555 = vst.msk [vmem:[%s331_s8 + $0x8] sm:$0xf] %vm552_vm6, %v550_v47 }
 0x233   : > { %553 = vst.msk [vmem:[%s331_s8] sm:$0xf] %vm552_vm6, %v548_v49 }
 0x26d   : > { %v1053_v50 = vpop.permute.xlu2 %1052 }
 0x26e   : > { %v1055_v57 = vunpack.i.h.bf16 %v1053_v50  ;;  %v1054_v58 = vunpack.i.l.bf16 %v1053_v50 }
 0x270   : > { %v569_v2 = vrot.slane %v1055_v57, 4  ;;  %v571_v3 = vrot.slane %v1054_v58, 4 }
 0x272   : > { %v570_v12 = vsel %vm438_vm5, %v569_v2, %v1054_v58  ;;  %v572_v13 = vsel %vm438_vm5, %v1055_v57, %v571_v3 }
 0x273   : > { %v576_v23 = vperm.slane %v570_v12, %v1193_v44  ;;  %v580_v24 = vperm.slane %v572_v13, %v1193_v44 }
 0x275   : > { %v1068_v52 = vpop.permute.xlu2 %1067  ;;  %v595_v35 = vrot.slane %v576_v23, 4  ;;  %v607_v36 = vrot.slane %v580_v24, 4 }
 0x276   : > { %v1070_v53 = vunpack.i.h.bf16 %v1068_v52  ;;  %v1069_v54 = vunpack.i.l.bf16 %v1068_v52 }
 0x278   : > { %v711_v55 = vrot.slane %v1070_v53, 4  ;;  %v713_v56 = vrot.slane %v1069_v54, 4 }
 0x27a   : > { %v712_v59 = vsel %vm438_vm5, %v711_v55, %v1069_v54  ;;  %v714_v60 = vsel %vm438_vm5, %v1070_v53, %v713_v56 }
 0x27b   : > { %v718_v0 = vperm.slane %v712_v59, %v1193_v44  ;;  %v722_v1 = vperm.slane %v714_v60, %v1193_v44 }
 0x27d   : > { %v723_v8 = vrot.slane %v718_v0, 4  ;;  %v735_v9 = vrot.slane %v722_v1, 4 }
 0x285   : > { %v1058_v61 = vpop.permute.xlu0 %1057 }
 0x286   : > { %v1060_v62 = vunpack.i.h.bf16 %v1058_v61  ;;  %v1059_v63 = vunpack.i.l.bf16 %v1058_v61 }
 0x288   : > { %v699_v4 = vrot.slane %v1060_v62, 4  ;;  %v701_v5 = vrot.slane %v1059_v63, 4 }
 0x28a   : > { %v700_v6 = vsel %vm438_vm5, %v699_v4, %v1059_v63  ;;  %v702_v7 = vsel %vm438_vm5, %v1060_v62, %v701_v5 }
 0x28b   : > { %v706_v10 = vperm.slane %v700_v6, %v1193_v44  ;;  %v710_v11 = vperm.slane %v702_v7, %v1193_v44 }
 0x28d   : > { %v724_v14 = vsel %vm438_vm5, %v723_v8, %v706_v10  ;;  %v725_v15 = vrot.slane %v706_v10, 4  ;;  %v736_v16 = vsel %vm438_vm5, %v735_v9, %v710_v11  ;;  %v737_v17 = vrot.slane %v710_v11, 4  ;;  %v1063_v18 = vpop.permute.xlu1 %1062 }
 0x28e   : > { %v730_v19 = vperm.slane %v724_v14, %v1198_v51  ;;  %v742_v20 = vperm.slane %v736_v16, %v1198_v51  ;;  %v1065_v21 = vunpack.i.h.bf16 %v1063_v18  ;;  %v1064_v22 = vunpack.i.l.bf16 %v1063_v18 }
 0x28f   : > { %v726_v25 = vsel %vm438_vm5, %v718_v0, %v725_v15  ;;  %v738_v26 = vsel %vm438_vm5, %v722_v1, %v737_v17 }
 0x290   : > { %v734_v27 = vperm.slane %v726_v25, %v1198_v51  ;;  %v746_v28 = vperm.slane %v738_v26, %v1198_v51  ;;  %v581_v29 = vrot.slane %v1065_v21, 4  ;;  %v583_v30 = vrot.slane %v1064_v22, 4 }
 0x291   : > { %v747_v31 = vrot.slane %v730_v19, 4  ;;  %v751_v33 = vrot.slane %v742_v20, 4 }
 0x292   : > { %v749_v32 = vrot.slane %v734_v27, 4  ;;  %v753_v34 = vrot.slane %v746_v28, 4  ;;  %v582_v37 = vsel %vm438_vm5, %v581_v29, %v1064_v22  ;;  %v584_v38 = vsel %vm438_vm5, %v1065_v21, %v583_v30 }
 0x293   : > { %v748_v48 = vsel %vm438_vm5, 0.0, %v747_v31  ;;  %v752_v49 = vsel %vm438_vm5, 0.0, %v751_v33  ;;  %v588_v50 = vperm.slane %v582_v37, %v1193_v44  ;;  %v592_v52 = vperm.slane %v584_v38, %v1193_v44 }
 0x294   : > { %v750_v39 = vsel %vm438_vm5, 0.0, %v749_v32  ;;  %v754_v40 = vsel %vm438_vm5, 0.0, %v753_v34  ;;  %v755_v41 = vsel %vm438_vm5, %v749_v32, %v730_v19  ;;  %v766_v42 = vsel %vm438_vm5, %v753_v34, %v742_v20 }
 0x295   : > { %v759_v43 = vperm.slane %v755_v41, %v1193_v44  ;;  %v760_v45 = vrot.slane %v750_v39, 4  ;;  %v770_v46 = vperm.slane %v766_v42, %v1193_v44  ;;  %v771_v47 = vrot.slane %v754_v40, 4 }
 0x296   : > { %v593_v59 = vrot.slane %v588_v50, 4  ;;  %v596_v60 = vsel %vm438_vm5, %v588_v50, %v595_v35  ;;  %v605_v62 = vrot.slane %v592_v52, 4  ;;  %v608_v63 = vsel %vm438_vm5, %v592_v52, %v607_v36 }
 0x297   : > { %v761_v53 = vsel %vm438_vm5, %v760_v45, %v748_v48  ;;  %v772_v54 = vsel %vm438_vm5, %v771_v47, %v752_v49  ;;  %v779_v55 = vrot.slane %v759_v43, 4  ;;  %v791_v56 = vrot.slane %v770_v46, 4 }
 0x298   : > { %v765_v57 = vperm.slane %v761_v53, %v1193_v44  ;;  %v776_v58 = vperm.slane %v772_v54, %v1193_v44  ;;  %v604_v61 = vperm.slane %v596_v60, %v1198_v51  ;;  %v594_v6 = vsel %vm438_vm5, %v593_v59, %v576_v23 }
 0x299   : > { %v606_v7 = vsel %vm438_vm5, %v605_v62, %v580_v24  ;;  %v600_v10 = vperm.slane %v594_v6, %v1198_v51  ;;  %v616_v16 = vperm.slane %v608_v63, %v1198_v51 }
 0x29a   : > { %v777_v0 = vrot.slane %v765_v57, 4  ;;  %v780_v1 = vsel %vm438_vm5, %v765_v57, %v779_v55  ;;  %v789_v2 = vrot.slane %v776_v58, 4  ;;  %v792_v3 = vsel %vm438_vm5, %v776_v58, %v791_v56 }
 0x29b   : > { %v788_v4 = vperm.slane %v780_v1, %v1198_v51  ;;  %v800_v5 = vperm.slane %v792_v3, %v1198_v51  ;;  %v612_v11 = vperm.slane %v606_v7, %v1198_v51  ;;  %v617_v17 = vrot.slane %v600_v10, 4 }
 0x29c   : > { %v778_v8 = vsel %vm438_vm5, %v777_v0, %v759_v43  ;;  %v790_v9 = vsel %vm438_vm5, %v789_v2, %v770_v46  ;;  %v619_v18 = vrot.slane %v604_v61, 4  ;;  %v623_v30 = vrot.slane %v616_v16, 4 }
 0x29d   : > { %v784_v12 = vperm.slane %v778_v8, %v1198_v51  ;;  %v796_v13 = vperm.slane %v790_v9, %v1198_v51  ;;  %v805_v14 = vrot.slane %v800_v5, 4  ;;  %v807_v15 = vrot.slane %v788_v4, 4 }
 0x29e   : > { %v621_v19 = vrot.slane %v612_v11, 4  ;;  %v620_v26 = vsel %vm438_vm5, 0.0, %v619_v18  ;;  %v618_v29 = vsel %vm438_vm5, 0.0, %v617_v17  ;;  %v625_v33 = vsel %vm438_vm5, %v619_v18, %v600_v10 }
 0x29f   : > { %v801_v20 = vrot.slane %v796_v13, 4  ;;  %v803_v21 = vrot.slane %v784_v12, 4  ;;  %v806_v22 = vsel %vm438_vm5, %v805_v14, %v788_v4  ;;  %v808_v23 = vsel %vm438_vm5, %v800_v5, %v807_v15 }
 0x2a0   : > { %v811_v24 = vpack.c.bf16 %v806_v22, %v806_v22  ;;  %v812_v25 = vpack.c.bf16 %v808_v23, %v808_v23  ;;  %v630_v34 = vrot.slane %v620_v26, 4  ;;  %v622_v35 = vsel %vm438_vm5, 0.0, %v621_v19 }
 0x2a1   : > { %v802_v27 = vsel %vm438_vm5, %v801_v20, %v784_v12  ;;  %v804_v28 = vsel %vm438_vm5, %v796_v13, %v803_v21  ;;  %v624_v36 = vsel %vm438_vm5, 0.0, %v623_v30  ;;  %v629_v37 = vperm.slane %v625_v33, %v1193_v44 }
 0x2a2   : > { %v809_v31 = vpack.c.bf16 %v802_v27, %v802_v27  ;;  %v810_v32 = vpack.c.bf16 %v804_v28, %v804_v28  ;;  %815 = vst.msk [vmem:[%s347_s10 + $0x8] sm:$0xf] %vm552_vm6, %v811_v24  ;;  %v636_v38 = vsel %vm438_vm5, %v623_v30, %v612_v11  ;;  %v631_v39 = vsel %vm438_vm5, %v630_v34, %v618_v29 }
 0x2a3   : > { %816 = vst.msk [vmem:[%s347_s10 + $0xc] sm:$0xf] %vm552_vm6, %v812_v25  ;;  %v640_v40 = vperm.slane %v636_v38, %v1193_v44  ;;  %v641_v41 = vrot.slane %v624_v36, 4  ;;  %v635_v42 = vperm.slane %v631_v39, %v1193_v44  ;;  %v649_v43 = vrot.slane %v629_v37, 4 }
 0x2a4   : > { %813 = vst.msk [vmem:[%s347_s10] sm:$0xf] %vm552_vm6, %v809_v31 }
 0x2a5   : > { %814 = vst.msk [vmem:[%s347_s10 + $0x4] sm:$0xf] %vm552_vm6, %v810_v32  ;;  %v642_v45 = vsel %vm438_vm5, %v641_v41, %v622_v35  ;;  %v661_v46 = vrot.slane %v640_v40, 4  ;;  %v647_v48 = vrot.slane %v635_v42, 4  ;;  %v650_v49 = vsel %vm438_vm5, %v635_v42, %v649_v43 }
 0x2a6   : > { %v646_v47 = vperm.slane %v642_v45, %v1193_v44  ;;  %v658_v50 = vperm.slane %v650_v49, %v1198_v51 }
 0x2a7   : > { %v648_v52 = vsel %vm438_vm5, %v647_v48, %v629_v37 }
 0x2a8   : > { %v659_v53 = vrot.slane %v646_v47, 4  ;;  %v662_v54 = vsel %vm438_vm5, %v646_v47, %v661_v46  ;;  %v654_v55 = vperm.slane %v648_v52, %v1198_v51  ;;  %v677_v57 = vrot.slane %v658_v50, 4 }
 0x2a9   : > { %v670_v56 = vperm.slane %v662_v54, %v1198_v51 }
 0x2aa   : > { %v660_v58 = vsel %vm438_vm5, %v659_v53, %v640_v40  ;;  %v673_v59 = vrot.slane %v654_v55, 4 }
 0x2ab   : > { %v666_v44 = vperm.slane %v660_v58, %v1198_v51  ;;  %v675_v60 = vrot.slane %v670_v56, 4  ;;  %v678_v61 = vsel %vm438_vm5, %v670_v56, %v677_v57 }
 0x2ac   : > { %v682_v62 = vpack.c.bf16 %v678_v61, %v678_v61 }
 0x2ad   : > { %v671_v63 = vrot.slane %v666_v44, 4  ;;  %v674_v0 = vsel %vm438_vm5, %v666_v44, %v673_v59  ;;  %v676_v1 = vsel %vm438_vm5, %v675_v60, %v658_v50 }
 0x2ae   : > { %v680_v2 = vpack.c.bf16 %v674_v0, %v674_v0  ;;  %v681_v3 = vpack.c.bf16 %v676_v1, %v676_v1  ;;  %686 = vst.msk [vmem:[%s339_s13 + $0xc] sm:$0xf] %vm552_vm6, %v682_v62 }
 0x2af   : > { %v672_v4 = vsel %vm438_vm5, %v671_v63, %v654_v55 }
 0x2b0   : > { %v679_v5 = vpack.c.bf16 %v672_v4, %v672_v4  ;;  %684 = vst.msk [vmem:[%s339_s13 + $0x4] sm:$0xf] %vm552_vm6, %v680_v2 }
 0x2b1   : > { %685 = vst.msk [vmem:[%s339_s13 + $0x8] sm:$0xf] %vm552_vm6, %v681_v3 }
 0x2b2   : > { %683 = vst.msk [vmem:[%s339_s13] sm:$0xf] %vm552_vm6, %v679_v5 }
 0x2b3 PF: > { %s18_s26 = sadd.s32 1, %s1100_s26   ;;  %s1360_s24 = smov %s1096_s25 }
 0x2b4   : > { %p15_p5 = scmp.ge.s32.totalorder %s18_s26, 4   ;;  %s1361_s25 = smov %s1363_s27 }
 0x2b6   :  { %17 = sbr.rel (!%p15_p5) target bundleno = 2 (0x2), region = 94 }

// kernel: transformer_forward.7
= control target key start
LH: loop header
LB: loop body
LE: loop exit
PB: predicated region body
PF: predicated region fallthrough
CT: control target
= control target key end

     0   :  { %s1257_s21 = smov 0   ;;  %s1259_s22 = smov 0   ;;  %s1442_s0 = inlined_call_operand.vmem [shape: bf16[2,4,8,8], index: 0, kind: input, shape index: {}]   ;;  %s1443_s1 = inlined_call_operand.vmem [shape: bf16[2,4,8,8], index: 1, kind: input, shape index: {}]   ;;  %s1444_s2 = inlined_call_operand.vmem [shape: bf16[2,4,8,8], index: 2, kind: input, shape index: {}]   ;;  %s1445_s3 = inlined_call_operand.vmem [shape: f32[2,8,32], index: 3, kind: input, shape index: {}]   ;;  %s1446_s4 = inlined_call_operand.vmem [shape: bf16[32,32], index: 4, kind: input, shape index: {}]   ;;  %s1447_s5 = inlined_call_operand.vmem [shape: f32[1,32], index: 5, kind: input, shape index: {}]   ;;  %s1448_s6 = inlined_call_operand.vmem [shape: f32[2,8,32], index: 6, kind: output, shape index: {}]  }
   0x1   :  { %s1261_s23 = smov 0  }
   0x2 LB: > { %s35_s24 = sadd.s32 1, %s1208_s22  ;;  %p1097_p0 = scmp.ge.s32.totalorder %s1212_s23, 1  ;;  %s1212_s23 = sphi %s1261_s23, %s16_s23   ;;  %s1208_s22 = sphi %s1259_s22, %s1450_s22   ;;  %s1204_s21 = sphi %s1257_s21, %s1449_s21  }
   0x3   : > { %p37_p1 = scmp.ge.s32.totalorder %s35_s24, 2  ;;  %p298_p2 = scmp.lt.s32.totalorder %s1212_s23, 3 }
   0x5   : > { %s1452_s24 = smov (%p37_p1, %s35_s24), 0  ;;  %p299_p3 = pnand %p1097_p0, %p298_p2 }
   0x6   : > { %p360_p4 = scmp.lt.s32.totalorder (!%p299_p3), %s1204_s21, 1  ;;  %s1219_s11 = smov (!%p299_p3), 16  }
   0x7   : > { %302 = sbr.rel (%p299_p3) target bundleno = 917 (0x395), region = 44  ;;  %s1220_s12 = smov (!%p299_p3), 24  }
   0x8   : > { %s1221_s13 = smov (!%p299_p3), 8  }
   0xc   : > { %s1454_s21 = smov (!%p360_p4, %s1204_s21), 1  ;;  %vm420_vm0 = vcmask 64512   ;;  %vm411_vm1 = vcmask 7168   ;;  %v1214_v12 = vmov -inf   ;;  %v523_v13 = vlaneseq }
   0xd   : > { %s1278_s25 = sshll.u32 %s1454_s21, 4  ;;  %412 = vst.msk [vmem:[#allocation2] sm:$0xff] %vm411_vm1, %v1214_v12  ;;  %v1215_v36 = vmov 0   ;;  %v1216_v37 = vmov 0.0   ;;  %vm667_vm3 = vcmask 1043456   ;;  %vm793_vm4 = vcmask 1047556  }
   0xe   : > { %s377_s28 = scalar_lea.vmem %s1443_s1, %s1278_s25  ;;  %s367_s7 = scalar_lea.vmem %s1442_s0, %s1278_s25  ;;  %413 = vst.msk [vmem:[#allocation2 + $0x8] sm:$0xff] %vm411_vm1, %v1214_v12  ;;  %v524_v14 = vshrl.u32 %v523_v13, 7  ;;  %v529_v15 = vand.u32 127, %v523_v13  ;;  %1163 = vset.pattern.permute.xlu0 %v1215_v36  ;;  %1162 = vset.pattern.permute.xlu2 %v1215_v36  ;;  %vm917_vm5 = vcmask 130048   ;;  %vm919_vm6 = vcmask 195584  }
   0xf   : > { %v433_v0 = vld [vmem:[%s377_s28] sm:$0xf]  ;;  %v435_v1 = vld [vmem:[%s377_s28 + $0x8] sm:$0xf]  ;;  %v436_v2 = vld [vmem:[%s377_s28 + $0xc] sm:$0xf]  ;;  %1164 = vset.pattern.permute.xlu1 %v1215_v36  ;;  %s389_s10 = scalar_lea.vmem %s1444_s2, %s1278_s25 }
  0x10   : > { %v446_v3 = vsel %vm420_vm0, %v433_v0, 0  ;;  %v484_v4 = vsel %vm420_vm0, %v435_v1, 0  ;;  %v503_v5 = vsel %vm420_vm0, %v436_v2, 0  ;;  %v434_v6 = vld [vmem:[%s377_s28 + $0x4] sm:$0xf]  ;;  %414 = vst.msk [vmem:[#allocation2 + $0x10] sm:$0xff] %vm411_vm1, %v1214_v12  ;;  %vm532_vm2 = vcmp.le.s32.totalorder %v529_v15, %v524_v14 }
  0x11   : > { %455 = vmatpush.bf16.xpose.msra.mxu0 %v446_v3  ;;  %493 = vmatpush.bf16.xpose.msra.mxu2 %v484_v4  ;;  %v465_v7 = vsel %vm420_vm0, %v434_v6, 0  ;;  %v429_v8 = vld [vmem:[%s367_s7] sm:$0xf]  ;;  %v431_v9 = vld [vmem:[%s367_s7 + $0x8] sm:$0xf]  ;;  %415 = vst.msk [vmem:[#allocation2 + $0x18] sm:$0xff] %vm411_vm1, %v1214_v12 }
  0x12   : > { %512 = vmatpush.bf16.xpose.msra.mxu3 %v503_v5  ;;  %474 = vmatpush.bf16.xpose.msra.mxu1 %v465_v7  ;;  %v432_v10 = vld [vmem:[%s367_s7 + $0xc] sm:$0xf]  ;;  %v430_v11 = vld [vmem:[%s367_s7 + $0x4] sm:$0xf]  ;;  %418 = vst.msk [vmem:[#allocation3 + $0x10] sm:$0xff] %vm411_vm1, %v1216_v37  ;;  %vm942_vm7 = vcmask 261120  }
  0x13   : > { %416 = vst.msk [vmem:[#allocation3] sm:$0xff] %vm411_vm1, %v1216_v37  ;;  %v439_v54 = vld [vmem:[%s389_s10 + $0x8] sm:$0xf]  ;;  %v440_v56 = vld [vmem:[%s389_s10 + $0xc] sm:$0xf]  ;;  %s1104_s18 = sshll.u32 %s1454_s21, 3 }
  0x14   : > { %417 = vst.msk [vmem:[#allocation3 + $0x8] sm:$0xff] %vm411_vm1, %v1216_v37  ;;  %v1328_v38 = vld [vmem:[#allocation2] sm:$0xff]  ;;  %v707_v55 = vsel %vm667_vm3, %v439_v54, 0  ;;  %v726_v57 = vsel %vm667_vm3, %v440_v56, 0  ;;  %s398_s25 = scalar_lea.vmem %s1445_s3, %s1104_s18  ;;  %s405_s30 = scalar_lea.vmem %s1448_s6, %s1104_s18 }
  0x15   : > { %419 = vst.msk [vmem:[#allocation3 + $0x18] sm:$0xff] %vm411_vm1, %v1216_v37  ;;  %v1340_v44 = vld [vmem:[#allocation2 + $0x8] sm:$0xff]  ;;  %v437_v58 = vld [vmem:[%s389_s10] sm:$0xf]  ;;  %v438_v61 = vld [vmem:[%s389_s10 + $0x4] sm:$0xf] }
  0x16   : > { %421 = vst.msk [vmem:[#allocation4] sm:$0xff] %vm420_vm0, %v1216_v37  ;;  %v669_v59 = vsel %vm667_vm3, %v437_v58, 0  ;;  %v688_v63 = vsel %vm667_vm3, %v438_v61, 0 }
  0x17   : > { %422 = vst.msk [vmem:[#allocation4 + $0x8] sm:$0xff] %vm420_vm0, %v1216_v37  ;;  %v1338_v42 = vld [vmem:[#allocation2 + $0x10] sm:$0xff] }
  0x18   : > { %1106 = vmatmul.msk.bf16.vlgmr.msra.gmra.mxu0 %vm420_vm0, %v429_v8  ;;  %1108 = vmatmul.msk.bf16.vlgmr.msra.gmra.mxu2 %vm420_vm0, %v431_v9  ;;  %423 = vst.msk [vmem:[#allocation4 + $0x10] sm:$0xff] %vm420_vm0, %v1216_v37  ;;  %v542_v50 = vld [vmem:[#allocation2 + $0x18] sm:$0xff] }
  0x19   : > { %1109 = vmatmul.msk.bf16.vlgmr.msra.gmra.mxu3 %vm420_vm0, %v432_v10  ;;  %1107 = vmatmul.msk.bf16.vlgmr.msra.gmra.mxu1 %vm420_vm0, %v430_v11  ;;  %424 = vst.msk [vmem:[#allocation4 + $0x18] sm:$0xff] %vm420_vm0, %v1216_v37 }
  0x1a   : > { %716 = vmatpush.bf16.msrb.mxu2 %v707_v55  ;;  %735 = vmatpush.bf16.msrb.mxu3 %v726_v57 }
  0x1b   : > { %678 = vmatpush.bf16.msrb.mxu0 %v669_v59  ;;  %697 = vmatpush.bf16.msrb.mxu1 %v688_v63 }
  0x1f   : > { %v634_v55 = vld [vmem:[#allocation4 + $0x10] sm:$0xff] }
  0x95   : > { %v457_v16 = vpop.f32.mrf.mxu0 }
  0x96   : > { %v518_v17 = vmul.f32 0.35355338, %v457_v16  ;;  %v476_v18 = vpop.f32.mrf.mxu1 }
  0x97   : > { %v519_v20 = vmul.f32 0.35355338, %v476_v18 }
  0x98   : > { %v1301_v19 = vsel %vm532_vm2, %v518_v17, -1e+30 }
  0x99   : > { %v543_v21 = vsel %vm420_vm0, %v1301_v19, -inf  ;;  %v1306_v25 = vsel %vm532_vm2, %v519_v20, -1e+30 }
  0x9a   : > { %544 = vmax.xlane.f32.xlu1 %v543_v21  ;;  %v546_v30 = vsel %vm420_vm0, %v1306_v25, -inf }
  0x9b   : > { %v495_v22 = vpop.f32.mrf.mxu2 }
  0x9c   : > { %v520_v23 = vmul.f32 0.35355338, %v495_v22  ;;  %v514_v24 = vpop.f32.mrf.mxu3 }
  0x9d   : > { %v459_v26 = vpop.f32.mrf.mxu0  ;;  %v521_v27 = vmul.f32 0.35355338, %v514_v24 }
  0x9e   : > { %v1309_v28 = vsel %vm532_vm2, %v520_v23, -1e+30  ;;  %v478_v31 = vpop.f32.mrf.mxu1 }
  0x9f   : > { %v549_v29 = vsel %vm420_vm0, %v1309_v28, -inf  ;;  %v1316_v32 = vsel %vm532_vm2, %v521_v27, -1e+30 }
  0xa0   : > { %550 = vmax.xlane.f32.xlu0 %v549_v29  ;;  %v552_v35 = vsel %vm420_vm0, %v1316_v32, -inf }
  0xa2   : > { %547 = vmax.xlane.f32.xlu1 %v546_v30  ;;  %v605_v30 = vld [vmem:[#allocation3 + $0x10] sm:$0xff] }
  0xa3   : > { %v497_v33 = vpop.f32.mrf.mxu2 }
  0xa4   : > { %v516_v34 = vpop.f32.mrf.mxu3 }
  0xa5   : > { %v606_v34 = vld [vmem:[#allocation3 + $0x18] sm:$0xff] }
  0xa8   : > { %553 = vmax.xlane.f32.xlu0 %v552_v35 }
 0x10d   : > { %v545_v39 = vpop.xlane.xlu1 %544 }
 0x10e   : > { %v1331_v40 = vmax.f32 %v1328_v38, %v545_v39  ;;  %v603_v39 = vld [vmem:[#allocation3] sm:$0xff] }
 0x110   : > { %v559_v41 = vsub.f32 %v1328_v38, %v1331_v40  ;;  %749 = vst.msk [vmem:[#allocation2] sm:$0xff] %vm411_vm1, %v1331_v40  ;;  %573 = vperm.xlu0 %1163, %v1331_v40  }
 0x112   : > { %v563_v22 = vmul.f32 1.442695, %v559_v41 }
 0x113   : > { %v551_v43 = vpop.xlane.xlu0 %550 }
 0x114   : > { %v1343_v45 = vmax.f32 %v1338_v42, %v551_v43 }
 0x115   : > { %v548_v46 = vpop.xlane.xlu1 %547 }
 0x116   : > { %v561_v47 = vsub.f32 %v1338_v42, %v1343_v45  ;;  %751 = vst.msk [vmem:[#allocation2 + $0x10] sm:$0xff] %vm411_vm1, %v1343_v45  ;;  %v1350_v48 = vmax.f32 %v1340_v44, %v548_v46  ;;  %583 = vperm.xlu2 %1162, %v1343_v45   ;;  %v604_v46 = vld [vmem:[#allocation3 + $0x8] sm:$0xff] }
 0x118   : > { %v560_v49 = vsub.f32 %v1340_v44, %v1350_v48  ;;  %750 = vst.msk [vmem:[#allocation2 + $0x8] sm:$0xff] %vm411_vm1, %v1350_v48  ;;  %578 = vperm.xlu1 %1164, %v1350_v48   ;;  %v567_v23 = vmul.f32 1.442695, %v561_v47 }
 0x11a   : > { %v565_v27 = vmul.f32 1.442695, %v560_v49 }
 0x11b   : > { %v554_v51 = vpop.xlane.xlu0 %553 }
 0x11c   : > { %v558_v52 = vmax.f32 %v542_v50, %v554_v51 }
 0x11e   : > { %v562_v53 = vsub.f32 %v542_v50, %v558_v52  ;;  %752 = vst.msk [vmem:[#allocation2 + $0x18] sm:$0xff] %vm411_vm1, %v558_v52  ;;  %588 = vperm.xlu2 %1162, %v558_v52  }
 0x170   : > { %v584_v60 = vpop.permute.xlu2 %583 }
 0x171   : > { %v593_v62 = vsub.f32 %v1309_v28, %v584_v60 }
 0x173   : > { %v599_v0 = vmul.f32 1.442695, %v593_v62 }
 0x175   : > { %1166 = vpow2.f32 %v599_v0  ;;  %v635_v0 = vld [vmem:[#allocation4 + $0x18] sm:$0xff] }
 0x178   : > { %v589_v1 = vpop.permute.xlu2 %588 }
 0x179   : > { %v594_v2 = vsub.f32 %v1316_v32, %v589_v1  ;;  %v632_v1 = vld [vmem:[#allocation4] sm:$0xff] }
 0x17b   : > { %v1167_v3 = vpop.eup %1166  ;;  %v601_v4 = vmul.f32 1.442695, %v594_v2 }
 0x17c   : > { %v617_v5 = vsel %vm420_vm0, %v1167_v3, 0.0  ;;  %v662_v6 = vpack.c.bf16 %v1167_v3, %v1167_v3 }
 0x17d   : > { %1168 = vpow2.f32 %v601_v4  ;;  %618 = vadd.xlane.f32.xlu2 %v617_v5 }
 0x17e   : > { %1112 = vmatmul.msk.bf16.vlgmr.msrb.gmra.mxu2 %vm420_vm0, %v662_v6 }
 0x182   : > { %v574_v7 = vpop.permute.xlu0 %573 }
 0x183   : > { %v1169_v8 = vpop.eup %1168  ;;  %v591_v9 = vsub.f32 %v1301_v19, %v574_v7 }
 0x184   : > { %v620_v10 = vsel %vm420_vm0, %v1169_v8, 0.0  ;;  %v663_v11 = vpack.c.bf16 %v1169_v8, %v1169_v8 }
 0x185   : > { %v595_v12 = vmul.f32 1.442695, %v591_v9  ;;  %621 = vadd.xlane.f32.xlu0 %v620_v10  ;;  %v633_v10 = vld [vmem:[#allocation4 + $0x8] sm:$0xff] }
 0x186   : > { %1113 = vmatmul.msk.bf16.vlgmr.msrb.gmra.mxu3 %vm420_vm0, %v663_v11 }
 0x187   : > { %1170 = vpow2.f32 %v595_v12 }
 0x18a   : > { %v579_v13 = vpop.permute.xlu1 %578 }
 0x18b   : > { %v592_v14 = vsub.f32 %v1306_v25, %v579_v13  ;;  %v569_v25 = vmul.f32 1.442695, %v562_v53 }
 0x18d   : > { %v1171_v15 = vpop.eup %1170  ;;  %v597_v16 = vmul.f32 1.442695, %v592_v14 }
 0x18e   : > { %v611_v17 = vsel %vm420_vm0, %v1171_v15, 0.0  ;;  %v660_v18 = vpack.c.bf16 %v1171_v15, %v1171_v15 }
 0x18f   : > { %1172 = vpow2.f32 %v597_v16  ;;  %612 = vadd.xlane.f32.xlu1 %v611_v17  ;;  %v1217_v17 = vmov 1983009808  }
 0x190   : > { %1110 = vmatmul.msk.bf16.vlgmr.msrb.gmra.mxu0 %vm420_vm0, %v660_v18  ;;  %1174 = vpow2.f32 %v563_v22  ;;  %v798_v18 = vunpack.c.l.s4 %v1217_v17 }
 0x191   : > { %1176 = vpow2.f32 %v567_v23 }
 0x192   : > { %1178 = vpow2.f32 %v569_v25  ;;  %v799_v25 = vunpack.c.0.s8 %v798_v18 }
 0x193   : > { %1180 = vpow2.f32 %v565_v27 }
 0x195   : > { %v1173_v19 = vpop.eup %1172 }
 0x196   : > { %v614_v20 = vsel %vm420_vm0, %v1173_v19, 0.0  ;;  %v661_v21 = vpack.c.bf16 %v1173_v19, %v1173_v19  ;;  %v1175_v24 = vpop.eup %1174 }
 0x197   : > { %615 = vadd.xlane.f32.xlu2 %v614_v20  ;;  %v1177_v26 = vpop.eup %1176  ;;  %v607_v42 = vmul.f32 %v1175_v24, %v603_v39 }
 0x198   : > { %1111 = vmatmul.msk.bf16.vlgmr.msrb.gmra.mxu1 %vm420_vm0, %v661_v21  ;;  %v1179_v28 = vpop.eup %1178  ;;  %v609_v31 = vmul.f32 %v1177_v26, %v605_v30  ;;  %v1218_v30 = vmov 1934713408  }
 0x199   : > { %v1181_v29 = vpop.eup %1180  ;;  %v610_v35 = vmul.f32 %v1179_v28, %v606_v34 }
 0x19a   : > { %v608_v50 = vmul.f32 %v1181_v29, %v604_v46 }
 0x1a8   : > { %638 = vperm.xlu1 %1164, %v1175_v24  }
 0x1af   : > { %648 = vperm.xlu2 %1162, %v1177_v26  }
 0x1b7   : > { %653 = vperm.xlu2 %1162, %v1179_v28  }
 0x1bf   : > { %643 = vperm.xlu2 %1162, %v1181_v29  }
 0x1f0   : > { %v619_v32 = vpop.xlane.xlu2 %618 }
 0x1f1   : > { %v625_v33 = vadd.f32 %v619_v32, %v609_v31  ;;  %v822_v31 = vunpack.c.l.s4 %v1218_v30  ;;  %v1129_v30 = vld [vmem:[%s1446_s4 + $0x8] sm:$0xff] }
 0x1f2   : > { %952 = vmatpush.bf16.msra.mxu0 %v1129_v30 }
 0x1f3   : > { %630 = vst.msk [vmem:[#allocation3 + $0x10] sm:$0xff] %vm411_vm1, %v625_v33 }
 0x1f8   : > { %v622_v36 = vpop.xlane.xlu0 %621 }
 0x1f9   : > { %v626_v37 = vadd.f32 %v622_v36, %v610_v35 }
 0x1fa   : > { %v758_v38 = vld [vmem:[#allocation3 + $0x10] sm:$0xff] }
 0x1fb   : > { %631 = vst.msk [vmem:[#allocation3 + $0x18] sm:$0xff] %vm411_vm1, %v626_v37  ;;  %1182 = vrcp.f32 %v758_v38  ;;  %v823_v38 = vunpack.c.0.s8 %v822_v31  ;;  %v1128_v31 = vld [vmem:[%s1446_s4] sm:$0xff] }
 0x1fc   : > { %953 = vmatpush.bf16.msra.mxu0 %v1128_v31 }
 0x201   : > { %v1183_v40 = vpop.eup %1182  ;;  %v718_v41 = vpop.f32.mrf.mxu2 }
 0x202   : > { %780 = vperm.xlu0 %1163, %v1183_v40   ;;  %v613_v43 = vpop.xlane.xlu1 %612  ;;  %v759_v44 = vld [vmem:[#allocation3 + $0x18] sm:$0xff] }
 0x203   : > { %v623_v45 = vadd.f32 %v613_v43, %v607_v42  ;;  %1184 = vrcp.f32 %v759_v44 }
 0x205   : > { %628 = vst.msk [vmem:[#allocation3] sm:$0xff] %vm411_vm1, %v623_v45 }
 0x209   : > { %v1185_v47 = vpop.eup %1184  ;;  %v720_v48 = vpop.f32.mrf.mxu2 }
 0x20a   : > { %v737_v49 = vpop.f32.mrf.mxu3  ;;  %785 = vperm.xlu1 %1164, %v1185_v47   ;;  %v616_v51 = vpop.xlane.xlu2 %615 }
 0x20b   : > { %v624_v52 = vadd.f32 %v616_v51, %v608_v50 }
 0x20c   : > { %v756_v53 = vld [vmem:[#allocation3] sm:$0xff] }
 0x20d   : > { %629 = vst.msk [vmem:[#allocation3 + $0x8] sm:$0xff] %vm411_vm1, %v624_v52  ;;  %v680_v54 = vpop.f32.mrf.mxu0  ;;  %1186 = vrcp.f32 %v756_v53 }
 0x212   : > { %v739_v56 = vpop.f32.mrf.mxu3  ;;  %v649_v57 = vpop.permute.xlu2 %648 }
 0x213   : > { %v1187_v58 = vpop.eup %1186  ;;  %v658_v59 = vmul.f32 %v649_v57, %v634_v55 }
 0x214   : > { %770 = vperm.xlu2 %1162, %v1187_v58   ;;  %v757_v60 = vld [vmem:[#allocation3 + $0x8] sm:$0xff] }
 0x215   : > { %v743_v61 = vadd.f32 %v718_v41, %v658_v59  ;;  %v682_v62 = vpop.f32.mrf.mxu0  ;;  %v699_v63 = vpop.f32.mrf.mxu1  ;;  %1188 = vrcp.f32 %v757_v60 }
 0x217   : > { %747 = vst.msk [vmem:[#allocation4 + $0x10] sm:$0xff] %vm420_vm0, %v743_v61 }
 0x21a   : > { %v654_v2 = vpop.permute.xlu2 %653  ;;  %v639_v3 = vpop.permute.xlu1 %638 }
 0x21b   : > { %v1189_v4 = vpop.eup %1188  ;;  %v659_v5 = vmul.f32 %v654_v2, %v635_v0  ;;  %v656_v6 = vmul.f32 %v639_v3, %v632_v1 }
 0x21c   : > { %775 = vperm.xlu2 %1162, %v1189_v4  }
 0x21d   : > { %v744_v7 = vadd.f32 %v737_v49, %v659_v5  ;;  %v741_v8 = vadd.f32 %v680_v54, %v656_v6  ;;  %v701_v9 = vpop.f32.mrf.mxu1 }
 0x21e   : > { %v766_v20 = vld [vmem:[#allocation4 + $0x10] sm:$0xff] }
 0x21f   : > { %748 = vst.msk [vmem:[#allocation4 + $0x18] sm:$0xff] %vm420_vm0, %v744_v7 }
 0x220   : > { %745 = vst.msk [vmem:[#allocation4] sm:$0xff] %vm420_vm0, %v741_v8 }
 0x222   : > { %v644_v11 = vpop.permute.xlu2 %643 }
 0x223   : > { %v657_v12 = vmul.f32 %v644_v11, %v633_v10 }
 0x225   : > { %v742_v13 = vadd.f32 %v699_v63, %v657_v12 }
 0x226   : > { %v767_v33 = vld [vmem:[#allocation4 + $0x18] sm:$0xff] }
 0x227   : > { %746 = vst.msk [vmem:[#allocation4 + $0x8] sm:$0xff] %vm420_vm0, %v742_v13  ;;  %v764_v15 = vld [vmem:[#allocation4] sm:$0xff] }
 0x22e   : > { %v765_v26 = vld [vmem:[#allocation4 + $0x8] sm:$0xff] }
 0x26e   : > { %v771_v14 = vpop.permute.xlu2 %770 }
 0x26f   : > { %v788_v16 = vmul.f32 %v771_v14, %v764_v15 }
 0x271   : > { %v795_v23 = vrot.slane %v788_v16, 4 }
 0x274   : > { %v781_v19 = vpop.permute.xlu0 %780 }
 0x275   : > { %v790_v21 = vmul.f32 %v781_v19, %v766_v20 }
 0x276   : > { %v776_v22 = vpop.permute.xlu2 %775 }
 0x277   : > { %v792_v24 = vrot.slane %v790_v21, 4  ;;  %v796_v27 = vsel %vm793_vm4, %v790_v21, %v795_v23  ;;  %v789_v28 = vmul.f32 %v776_v22, %v765_v26 }
 0x278   : > { %v804_v32 = vperm.slane %v796_v27, %v799_v25 }
 0x279   : > { %v794_v29 = vsel %vm793_vm4, %v792_v24, %v788_v16  ;;  %v807_v35 = vrot.slane %v789_v28, 4 }
 0x27a   : > { %v800_v37 = vperm.slane %v794_v29, %v799_v25  ;;  %v831_v41 = vrot.slane %v804_v32, 4 }
 0x27c   : > { %v786_v34 = vpop.permute.xlu1 %785  ;;  %v819_v44 = vrot.slane %v800_v37, 4 }
 0x27d   : > { %v791_v36 = vmul.f32 %v786_v34, %v767_v33 }
 0x27f   : > { %v805_v39 = vrot.slane %v791_v36, 4  ;;  %v808_v40 = vsel %vm793_vm4, %v791_v36, %v807_v35 }
 0x280   : > { %v816_v42 = vperm.slane %v808_v40, %v799_v25 }
 0x281   : > { %v806_v43 = vsel %vm793_vm4, %v805_v39, %v789_v28  ;;  %v1165_v39 = vld [vmem:[%s1447_s5] ss:$0 sm:$0xff] }
 0x282   : > { %v812_v45 = vperm.slane %v806_v43, %v799_v25  ;;  %v829_v46 = vrot.slane %v816_v42, 4  ;;  %v832_v47 = vsel %vm793_vm4, %v816_v42, %v831_v41  ;;  %v959_v41 = vld [vmem:[%s398_s25] sm:$0xff] }
 0x283   : > { %v840_v48 = vperm.slane %v832_v47, %v823_v38 }
 0x284   : > { %v817_v49 = vrot.slane %v812_v45, 4  ;;  %v820_v50 = vsel %vm793_vm4, %v812_v45, %v819_v44  ;;  %v830_v51 = vsel %vm793_vm4, %v829_v46, %v804_v32 }
 0x285   : > { %v828_v52 = vperm.slane %v820_v50, %v823_v38  ;;  %v836_v53 = vperm.slane %v830_v51, %v823_v38  ;;  %v847_v54 = vrot.slane %v840_v48, 4 }
 0x286   : > { %v818_v55 = vsel %vm793_vm4, %v817_v49, %v800_v37 }
 0x287   : > { %v824_v56 = vperm.slane %v818_v55, %v823_v38  ;;  %v843_v57 = vrot.slane %v828_v52, 4  ;;  %v845_v58 = vrot.slane %v836_v53, 4  ;;  %v848_v59 = vsel %vm793_vm4, 0.0, %v847_v54 }
 0x288   : > { %v860_v60 = vsel %vm793_vm4, %v847_v54, %v836_v53  ;;  %v865_v61 = vrot.slane %v848_v59, 4 }
 0x289   : > { %v844_v62 = vsel %vm793_vm4, 0.0, %v843_v57  ;;  %v841_v63 = vrot.slane %v824_v56, 4  ;;  %v846_v0 = vsel %vm793_vm4, 0.0, %v845_v58  ;;  %v849_v1 = vsel %vm793_vm4, %v843_v57, %v824_v56 }
 0x28a   : > { %v854_v2 = vrot.slane %v844_v62, 4  ;;  %v853_v3 = vperm.slane %v849_v1, %v799_v25  ;;  %v864_v4 = vperm.slane %v860_v60, %v799_v25  ;;  %v866_v5 = vsel %vm793_vm4, %v865_v61, %v846_v0 }
 0x28b   : > { %v842_v6 = vsel %vm793_vm4, 0.0, %v841_v63  ;;  %v870_v7 = vperm.slane %v866_v5, %v799_v25 }
 0x28c   : > { %v855_v8 = vsel %vm793_vm4, %v854_v2, %v842_v6  ;;  %v873_v9 = vrot.slane %v853_v3, 4  ;;  %v885_v10 = vrot.slane %v864_v4, 4 }
 0x28d   : > { %v859_v11 = vperm.slane %v855_v8, %v799_v25  ;;  %v883_v12 = vrot.slane %v870_v7, 4 }
 0x28e   : > { %v886_v13 = vsel %vm793_vm4, %v870_v7, %v885_v10 }
 0x28f   : > { %v874_v14 = vsel %vm793_vm4, %v859_v11, %v873_v9  ;;  %v894_v15 = vperm.slane %v886_v13, %v823_v38  ;;  %v871_v16 = vrot.slane %v859_v11, 4  ;;  %v884_v17 = vsel %vm793_vm4, %v883_v12, %v864_v4 }
 0x290   : > { %v882_v18 = vperm.slane %v874_v14, %v823_v38  ;;  %v890_v19 = vperm.slane %v884_v17, %v823_v38 }
 0x291   : > { %v899_v20 = vrot.slane %v894_v15, 4  ;;  %v872_v21 = vsel %vm793_vm4, %v871_v16, %v853_v3 }
 0x292   : > { %v901_v22 = vrot.slane %v882_v18, 4  ;;  %v878_v23 = vperm.slane %v872_v21, %v823_v38  ;;  %v895_v24 = vrot.slane %v890_v19, 4 }
 0x293   : > { %v900_v26 = vsel %vm793_vm4, %v899_v20, %v882_v18 }
 0x294   : > { %908 = vrot.lane.b32.xlu0 %v900_v26, %s1219_s11  ;;  %v902_v25 = vsel %vm793_vm4, %v894_v15, %v901_v22  ;;  %v897_v27 = vrot.slane %v878_v23, 4  ;;  %v896_v28 = vsel %vm793_vm4, %v895_v24, %v878_v23 }
 0x295   : > { %912 = vrot.lane.b32.xlu2 %v902_v25, %s1220_s12 }
 0x296   : > { %v898_v29 = vsel %vm793_vm4, %v890_v19, %v897_v27 }
 0x297   : > { %904 = vrot.lane.b32.xlu1 %v898_v29, %s1221_s13 }
 0x2ef   : > { %v913_v35 = vpop.permute.xlu2 %912 }
 0x306   : > { %v909_v33 = vpop.permute.xlu0 %908 }
 0x309   : > { %v905_v32 = vpop.permute.xlu1 %904 }
 0x30a   : > { %v916_v34 = vsel %vm420_vm0, %v896_v28, %v905_v32 }
 0x30b   : > { %v918_v36 = vsel %vm917_vm5, %v916_v34, %v909_v33 }
 0x30c   : > { %v920_v37 = vsel %vm919_vm6, %v918_v36, %v913_v35 }
 0x30d   : > { %v921_v38 = vpack.c.bf16 %v920_v37, %v920_v37 }
 0x30f   : > { %1122 = vmatmul.msk.bf16.vlgmr.msra.gmra.mxu0 %vm942_vm7, %v921_v38 }
 0x38c   : > { %v955_v40 = vpop.f32.mrf.mxu0 }
 0x38d   : > { %v956_v42 = vadd.f32 %v1165_v39, %v955_v40 }
 0x38f   : > { %v960_v43 = vadd.f32 %v959_v41, %v956_v42 }
 0x391   : > { %961 = vst.msk [vmem:[%s405_s30] sm:$0xff] %vm942_vm7, %v960_v43 }
 0x394   : > { %v957_v44 = vpop.f32.mrf.mxu0 }
 0x395 PF: > { %s16_s23 = sadd.s32 1, %s1212_s23   ;;  %s1449_s21 = smov %s1208_s22 }
 0x396   : > { %p13_p5 = scmp.ge.s32.totalorder %s16_s23, 4   ;;  %s1450_s22 = smov %s1452_s24 }
 0x398   :  { %15 = sbr.rel (!%p13_p5) target bundleno = 2 (0x2), region = 95 }

</bundles_post_ra>
